<compile_context>
chip_gen: v5e
topology: v5e:2x2
jax: 0.10.0
libtpu: 0.0.40
codegen_flags: <defaults>
</compile_context>

<pallas_src>
import jax
import jax.numpy as jnp
from jax.experimental import pallas as pl
from jax.experimental.pallas import tpu as pltpu


# ---------------------------------------------------------------------------
# Fused kernel: encoder (1x1 conv + ReLU) + MLP head, one batch tile per step
# ---------------------------------------------------------------------------
def classifier_kernel(x_ref, w_enc_ref, b_enc_ref, w1_ref, b1_ref, w2_ref,
                      b2_ref, o_ref):
    # x_ref    : [bt, C_in, H*W] f32 (NCHW, spatial flattened -> lane-dense 256)
    # w_enc_ref: [C_enc, C_in]   f32 in SMEM (scalar table)
    # b_enc_ref: [C_enc]         f32 in SMEM
    # w1_ref   : [C_enc, H*W, 64]   matmul dtype (w1 rows grouped per channel)
    # b1_ref   : [1, 64]         f32
    # w2_ref   : [64, 128]       matmul dtype (zero-padded to 128 lanes)
    # b2_ref   : [1, 128]        f32 (zero-padded)
    # o_ref    : [bt, 128]       f32 (lane-dense; columns [:2] are the logits)
    bt, c_in, _ = x_ref.shape
    c_enc = w1_ref.shape[0]
    hid = w1_ref.shape[2]
    mm_dtype = w1_ref.dtype

    # Load every input channel once (reused for all encoder output channels).
    x_ch = [x_ref[:, c, :] for c in range(c_in)]            # each [bt, HW] f32

    # Encoder fused with Linear(features, 64):
    #   feats(NCHW flatten) = concat_o relu(sum_c x_c * w_enc[o,c] + b_enc[o])
    #   hidden = feats @ w1 = sum_o chan_o @ w1[o*HW:(o+1)*HW, :]
    # The K=C_in channel mix stays on the VPU; the MXU gets K=HW contractions.
    acc = jnp.zeros((bt, hid), jnp.float32)
    for o in range(c_enc):
        chan = x_ch[0] * w_enc_ref[o, 0]
        for c in range(1, c_in):
            chan = chan + x_ch[c] * w_enc_ref[o, c]
        chan = jnp.maximum(chan + b_enc_ref[o], 0.0)        # [bt, HW] f32
        acc = acc + jnp.dot(chan.astype(mm_dtype), w1_ref[o],
                            preferred_element_type=jnp.float32)

    hidden = jnp.maximum(acc + b1_ref[...], 0.0)            # [bt, 64] f32
    logits = jnp.dot(hidden.astype(mm_dtype), w2_ref[...],
                     preferred_element_type=jnp.float32) + b2_ref[...]
    o_ref[...] = logits.astype(o_ref.dtype)                 # lane-dense store


# ---------------------------------------------------------------------------
# Wrapper
# ---------------------------------------------------------------------------
def classifier_forward(x, params, *, batch_tile=None, matmul_dtype=jnp.bfloat16):
    w_enc, b_enc, w1, b1, w2, b2 = params
    B, C, H, W = x.shape
    HW = H * W
    C_enc, C_in = w_enc.shape
    assert C_in == C
    hidden = w1.shape[1]
    n_classes = w2.shape[1]
    assert w1.shape[0] == C_enc * HW

    OUT_PAD = 128  # lane-dense logits block; real logits = columns [:n_classes]

    if batch_tile is None:
        batch_tile = B if B <= 256 else 256
    assert B % batch_tile == 0, "batch must be divisible by batch_tile"

    # NCHW -> [B, C, H*W]: free reshape; keeps torch.flatten feature order so
    # no transposes / permutations are needed anywhere.
    x3 = x.reshape(B, C, HW)

    # One-time weight re-layouts (pure reshape / zero-pad, outside the kernel).
    w1r = w1.reshape(C_enc, HW, hidden).astype(matmul_dtype)
    b1r = b1.reshape(1, hidden).astype(jnp.float32)
    w2p = jnp.pad(w2.astype(matmul_dtype), ((0, 0), (0, OUT_PAD - n_classes)))
    b2p = jnp.pad(b2.astype(jnp.float32).reshape(1, n_classes),
                  ((0, 0), (0, OUT_PAD - n_classes)))

    out = pl.pallas_call(
        classifier_kernel,
        out_shape=jax.ShapeDtypeStruct((B, OUT_PAD), jnp.float32),
        grid_spec=pltpu.PrefetchScalarGridSpec(
            num_scalar_prefetch=0,
            grid=(B // batch_tile,),
            in_specs=[
                pl.BlockSpec((batch_tile, C, HW), lambda i: (i, 0, 0)),   # x tile
                pl.BlockSpec(memory_space=pltpu.MemorySpace.SMEM),        # w_enc
                pl.BlockSpec(memory_space=pltpu.MemorySpace.SMEM),        # b_enc
                pl.BlockSpec((C_enc, HW, hidden), lambda i: (0, 0, 0)),   # w1r
                pl.BlockSpec((1, hidden), lambda i: (0, 0)),              # b1
                pl.BlockSpec((hidden, OUT_PAD), lambda i: (0, 0)),        # w2 pad
                pl.BlockSpec((1, OUT_PAD), lambda i: (0, 0)),             # b2 pad
            ],
            out_specs=pl.BlockSpec((batch_tile, OUT_PAD), lambda i: (i, 0)),
        ),
        compiler_params=pltpu.CompilerParams(
            # Batch tiles are independent -> shards across v7x's 2 TensorCores;
            # harmless no-op on v5e/v6e.
            dimension_semantics=("parallel",),
            # Per-step working set < 1 MiB; 32 MiB is safe on every generation
            # including v7x's 64 MiB physical VMEM.
            vmem_limit_bytes=32 * 1024 * 1024,
        ),
    )(x3, w_enc, b_enc, w1r, b1r, w2p, b2p)

    return out[:, :n_classes]


# ---------------------------------------------------------------------------
# Parameter init (deterministic, PyTorch-style U(-1/sqrt(fan_in), 1/sqrt(fan_in)))
# ---------------------------------------------------------------------------
def init_params(key, c_in, c_enc, h, w, hidden=64, n_classes=2):
    features = c_enc * h * w
    ks = jax.random.split(key, 6)

    def uinit(k, shape, fan_in):
        bound = 1.0 / jnp.sqrt(fan_in)
        return jax.random.uniform(k, shape, jnp.float32, -bound, bound)

    w_enc = uinit(ks[0], (c_enc, c_in), c_in)         # 1x1 conv weight [out, in]
    b_enc = uinit(ks[1], (c_enc,), c_in)
    w1 = uinit(ks[2], (features, hidden), features)   # Linear(features, 64)
    b1 = uinit(ks[3], (hidden,), features)
    w2 = uinit(ks[4], (hidden, n_classes), hidden)    # Linear(64, 2)
    b2 = uinit(ks[5], (n_classes,), hidden)
    return w_enc, b_enc, w1, b1, w2, b2


# Pure-JAX f32 reference (same semantics as the PyTorch module with the
# stand-in 1x1-conv encoder).
def reference_forward(x, params):
    w_enc, b_enc, w1, b1, w2, b2 = params
    B = x.shape[0]
    enc = jnp.einsum('bchw,oc->bohw', x, w_enc) + b_enc[None, :, None, None]
    enc = jnp.maximum(enc, 0.0)
    feats = enc.reshape(B, -1)                        # NCHW flatten == torch
    h = jnp.maximum(feats @ w1 + b1, 0.0)
    return h @ w2 + b2


if __name__ == "__main__":
    B, C, H, W = 2, 4, 16, 16
    C_ENC = 8

    key = jax.random.PRNGKey(0)
    kx, kp = jax.random.split(key)
    x = jax.random.normal(kx, (B, C, H, W), dtype=jnp.float32)
    params = init_params(kp, C, C_ENC, H, W)

    out = jax.jit(classifier_forward)(x, params)
    out = jax.block_until_ready(out)
    assert out.shape == (B, 2) and out.dtype == jnp.float32

    # Loose tolerance: head matmuls run with bf16 inputs / f32 accumulation.
    ref = reference_forward(x, params)
    assert jnp.allclose(out, ref, rtol=5e-2, atol=5e-2)

    print("KERNEL_OK")
</pallas_src>

<mosaic_0001>
module attributes {stable_mosaic.version = 11 : i64} {
  func.func @classifier_kernel(%arg0: i32, %arg1: memref<2x4x256xf32, #tpu.memory_space<vmem>>, %arg2: memref<8x4xf32, #tpu.memory_space<smem>>, %arg3: memref<8xf32, #tpu.memory_space<smem>>, %arg4: memref<8x256x64xbf16, #tpu.memory_space<vmem>>, %arg5: memref<1x64xf32, #tpu.memory_space<vmem>>, %arg6: memref<64x128xbf16, #tpu.memory_space<vmem>>, %arg7: memref<1x128xf32, #tpu.memory_space<vmem>>, %arg8: memref<2x128xf32, #tpu.memory_space<vmem>>) attributes {dimension_semantics = [#tpu.dimension_semantics<parallel>], iteration_bounds = array<i64: 1>, scalar_prefetch = 0 : i64, scratch_operands = 0 : i64, tpu.core_type = #tpu.core_type<tc>, window_params = [{transform_indices = @transform_0, window_bounds = array<i64: 2, 4, 256>}, {transform_indices = @transform_1, window_bounds = array<i64: 8, 4>}, {transform_indices = @transform_2, window_bounds = array<i64: 8>}, {pipeline_mode = #tpu.pipeline_mode<synchronous>, transform_indices = @transform_3, window_bounds = array<i64: 8, 256, 64>}, {pipeline_mode = #tpu.pipeline_mode<synchronous>, transform_indices = @transform_4, window_bounds = array<i64: 1, 64>}, {pipeline_mode = #tpu.pipeline_mode<synchronous>, transform_indices = @transform_5, window_bounds = array<i64: 64, 128>}, {pipeline_mode = #tpu.pipeline_mode<synchronous>, transform_indices = @transform_6, window_bounds = array<i64: 1, 128>}, {transform_indices = @transform_7, window_bounds = array<i64: 2, 128>}]} {
    %c0 = arith.constant 0 : index
    %c0_0 = arith.constant 0 : index
    %c0_1 = arith.constant 0 : index
    %0 = vector.load %arg1[%c0, %c0_0, %c0_1] : memref<2x4x256xf32, #tpu.memory_space<vmem>>, vector<2x1x256xf32>
    %1 = vector.shape_cast %0 : vector<2x1x256xf32> to vector<2x256xf32>
    %c0_2 = arith.constant 0 : index
    %c1 = arith.constant 1 : index
    %c0_3 = arith.constant 0 : index
    %2 = vector.load %arg1[%c0_2, %c1, %c0_3] : memref<2x4x256xf32, #tpu.memory_space<vmem>>, vector<2x1x256xf32>
    %3 = vector.shape_cast %2 : vector<2x1x256xf32> to vector<2x256xf32>
    %c0_4 = arith.constant 0 : index
    %c2 = arith.constant 2 : index
    %c0_5 = arith.constant 0 : index
    %4 = vector.load %arg1[%c0_4, %c2, %c0_5] : memref<2x4x256xf32, #tpu.memory_space<vmem>>, vector<2x1x256xf32>
    %5 = vector.shape_cast %4 : vector<2x1x256xf32> to vector<2x256xf32>
    %c0_6 = arith.constant 0 : index
    %c3 = arith.constant 3 : index
    %c0_7 = arith.constant 0 : index
    %6 = vector.load %arg1[%c0_6, %c3, %c0_7] : memref<2x4x256xf32, #tpu.memory_space<vmem>>, vector<2x1x256xf32>
    %7 = vector.shape_cast %6 : vector<2x1x256xf32> to vector<2x256xf32>
    %cst = arith.constant 0.000000e+00 : f32
    %8 = vector.broadcast %cst : f32 to vector<2x64xf32>
    %c0_8 = arith.constant 0 : index
    %c0_9 = arith.constant 0 : index
    %9 = memref.load %arg2[%c0_8, %c0_9] : memref<8x4xf32, #tpu.memory_space<smem>>
    %10 = vector.broadcast %9 : f32 to vector<2x256xf32>
    %11 = arith.mulf %1, %10 : vector<2x256xf32>
    %c0_10 = arith.constant 0 : index
    %c1_11 = arith.constant 1 : index
    %12 = memref.load %arg2[%c0_10, %c1_11] : memref<8x4xf32, #tpu.memory_space<smem>>
    %13 = vector.broadcast %12 : f32 to vector<2x256xf32>
    %14 = arith.mulf %3, %13 : vector<2x256xf32>
    %15 = arith.addf %11, %14 : vector<2x256xf32>
    %c0_12 = arith.constant 0 : index
    %c2_13 = arith.constant 2 : index
    %16 = memref.load %arg2[%c0_12, %c2_13] : memref<8x4xf32, #tpu.memory_space<smem>>
    %17 = vector.broadcast %16 : f32 to vector<2x256xf32>
    %18 = arith.mulf %5, %17 : vector<2x256xf32>
    %19 = arith.addf %15, %18 : vector<2x256xf32>
    %c0_14 = arith.constant 0 : index
    %c3_15 = arith.constant 3 : index
    %20 = memref.load %arg2[%c0_14, %c3_15] : memref<8x4xf32, #tpu.memory_space<smem>>
    %21 = vector.broadcast %20 : f32 to vector<2x256xf32>
    %22 = arith.mulf %7, %21 : vector<2x256xf32>
    %23 = arith.addf %19, %22 : vector<2x256xf32>
    %c0_16 = arith.constant 0 : index
    %24 = memref.load %arg3[%c0_16] : memref<8xf32, #tpu.memory_space<smem>>
    %25 = vector.broadcast %24 : f32 to vector<2x256xf32>
    %26 = arith.addf %23, %25 : vector<2x256xf32>
    %cst_17 = arith.constant 0.000000e+00 : f32
    %27 = vector.broadcast %cst_17 : f32 to vector<2x256xf32>
    %28 = arith.maximumf %26, %27 : vector<2x256xf32>
    %29 = arith.truncf %28 : vector<2x256xf32> to vector<2x256xbf16>
    %c0_18 = arith.constant 0 : index
    %c0_19 = arith.constant 0 : index
    %c0_20 = arith.constant 0 : index
    %30 = vector.load %arg4[%c0_18, %c0_19, %c0_20] : memref<8x256x64xbf16, #tpu.memory_space<vmem>>, vector<1x256x64xbf16>
    %31 = vector.shape_cast %30 : vector<1x256x64xbf16> to vector<256x64xbf16>
    %cst_21 = arith.constant dense<0.000000e+00> : vector<2x64xf32>
    %32 = tpu.matmul %29, %31, %cst_21 {dimension_numbers = #tpu.dot_dimension_numbers<[1], [0], [0], [1], [0, 0, 1, 1], [], []>} : vector<2x256xbf16>, vector<256x64xbf16>, vector<2x64xf32> -> vector<2x64xf32>
    %33 = arith.addf %8, %32 : vector<2x64xf32>
    %c1_22 = arith.constant 1 : index
    %c0_23 = arith.constant 0 : index
    %34 = memref.load %arg2[%c1_22, %c0_23] : memref<8x4xf32, #tpu.memory_space<smem>>
    %35 = vector.broadcast %34 : f32 to vector<2x256xf32>
    %36 = arith.mulf %1, %35 : vector<2x256xf32>
    %c1_24 = arith.constant 1 : index
    %c1_25 = arith.constant 1 : index
    %37 = memref.load %arg2[%c1_24, %c1_25] : memref<8x4xf32, #tpu.memory_space<smem>>
    %38 = vector.broadcast %37 : f32 to vector<2x256xf32>
    %39 = arith.mulf %3, %38 : vector<2x256xf32>
    %40 = arith.addf %36, %39 : vector<2x256xf32>
    %c1_26 = arith.constant 1 : index
    %c2_27 = arith.constant 2 : index
    %41 = memref.load %arg2[%c1_26, %c2_27] : memref<8x4xf32, #tpu.memory_space<smem>>
    %42 = vector.broadcast %41 : f32 to vector<2x256xf32>
    %43 = arith.mulf %5, %42 : vector<2x256xf32>
    %44 = arith.addf %40, %43 : vector<2x256xf32>
    %c1_28 = arith.constant 1 : index
    %c3_29 = arith.constant 3 : index
    %45 = memref.load %arg2[%c1_28, %c3_29] : memref<8x4xf32, #tpu.memory_space<smem>>
    %46 = vector.broadcast %45 : f32 to vector<2x256xf32>
    %47 = arith.mulf %7, %46 : vector<2x256xf32>
    %48 = arith.addf %44, %47 : vector<2x256xf32>
    %c1_30 = arith.constant 1 : index
    %49 = memref.load %arg3[%c1_30] : memref<8xf32, #tpu.memory_space<smem>>
    %50 = vector.broadcast %49 : f32 to vector<2x256xf32>
    %51 = arith.addf %48, %50 : vector<2x256xf32>
    %cst_31 = arith.constant 0.000000e+00 : f32
    %52 = vector.broadcast %cst_31 : f32 to vector<2x256xf32>
    %53 = arith.maximumf %51, %52 : vector<2x256xf32>
    %54 = arith.truncf %53 : vector<2x256xf32> to vector<2x256xbf16>
    %c1_32 = arith.constant 1 : index
    %c0_33 = arith.constant 0 : index
    %c0_34 = arith.constant 0 : index
    %55 = vector.load %arg4[%c1_32, %c0_33, %c0_34] : memref<8x256x64xbf16, #tpu.memory_space<vmem>>, vector<1x256x64xbf16>
    %56 = vector.shape_cast %55 : vector<1x256x64xbf16> to vector<256x64xbf16>
    %cst_35 = arith.constant dense<0.000000e+00> : vector<2x64xf32>
    %57 = tpu.matmul %54, %56, %cst_35 {dimension_numbers = #tpu.dot_dimension_numbers<[1], [0], [0], [1], [0, 0, 1, 1], [], []>} : vector<2x256xbf16>, vector<256x64xbf16>, vector<2x64xf32> -> vector<2x64xf32>
    %58 = arith.addf %33, %57 : vector<2x64xf32>
    %c2_36 = arith.constant 2 : index
    %c0_37 = arith.constant 0 : index
    %59 = memref.load %arg2[%c2_36, %c0_37] : memref<8x4xf32, #tpu.memory_space<smem>>
    %60 = vector.broadcast %59 : f32 to vector<2x256xf32>
    %61 = arith.mulf %1, %60 : vector<2x256xf32>
    %c2_38 = arith.constant 2 : index
    %c1_39 = arith.constant 1 : index
    %62 = memref.load %arg2[%c2_38, %c1_39] : memref<8x4xf32, #tpu.memory_space<smem>>
    %63 = vector.broadcast %62 : f32 to vector<2x256xf32>
    %64 = arith.mulf %3, %63 : vector<2x256xf32>
    %65 = arith.addf %61, %64 : vector<2x256xf32>
    %c2_40 = arith.constant 2 : index
    %c2_41 = arith.constant 2 : index
    %66 = memref.load %arg2[%c2_40, %c2_41] : memref<8x4xf32, #tpu.memory_space<smem>>
    %67 = vector.broadcast %66 : f32 to vector<2x256xf32>
    %68 = arith.mulf %5, %67 : vector<2x256xf32>
    %69 = arith.addf %65, %68 : vector<2x256xf32>
    %c2_42 = arith.constant 2 : index
    %c3_43 = arith.constant 3 : index
    %70 = memref.load %arg2[%c2_42, %c3_43] : memref<8x4xf32, #tpu.memory_space<smem>>
    %71 = vector.broadcast %70 : f32 to vector<2x256xf32>
    %72 = arith.mulf %7, %71 : vector<2x256xf32>
    %73 = arith.addf %69, %72 : vector<2x256xf32>
    %c2_44 = arith.constant 2 : index
    %74 = memref.load %arg3[%c2_44] : memref<8xf32, #tpu.memory_space<smem>>
    %75 = vector.broadcast %74 : f32 to vector<2x256xf32>
    %76 = arith.addf %73, %75 : vector<2x256xf32>
    %cst_45 = arith.constant 0.000000e+00 : f32
    %77 = vector.broadcast %cst_45 : f32 to vector<2x256xf32>
    %78 = arith.maximumf %76, %77 : vector<2x256xf32>
    %79 = arith.truncf %78 : vector<2x256xf32> to vector<2x256xbf16>
    %c2_46 = arith.constant 2 : index
    %c0_47 = arith.constant 0 : index
    %c0_48 = arith.constant 0 : index
    %80 = vector.load %arg4[%c2_46, %c0_47, %c0_48] : memref<8x256x64xbf16, #tpu.memory_space<vmem>>, vector<1x256x64xbf16>
    %81 = vector.shape_cast %80 : vector<1x256x64xbf16> to vector<256x64xbf16>
    %cst_49 = arith.constant dense<0.000000e+00> : vector<2x64xf32>
    %82 = tpu.matmul %79, %81, %cst_49 {dimension_numbers = #tpu.dot_dimension_numbers<[1], [0], [0], [1], [0, 0, 1, 1], [], []>} : vector<2x256xbf16>, vector<256x64xbf16>, vector<2x64xf32> -> vector<2x64xf32>
    %83 = arith.addf %58, %82 : vector<2x64xf32>
    %c3_50 = arith.constant 3 : index
    %c0_51 = arith.constant 0 : index
    %84 = memref.load %arg2[%c3_50, %c0_51] : memref<8x4xf32, #tpu.memory_space<smem>>
    %85 = vector.broadcast %84 : f32 to vector<2x256xf32>
    %86 = arith.mulf %1, %85 : vector<2x256xf32>
    %c3_52 = arith.constant 3 : index
    %c1_53 = arith.constant 1 : index
    %87 = memref.load %arg2[%c3_52, %c1_53] : memref<8x4xf32, #tpu.memory_space<smem>>
    %88 = vector.broadcast %87 : f32 to vector<2x256xf32>
    %89 = arith.mulf %3, %88 : vector<2x256xf32>
    %90 = arith.addf %86, %89 : vector<2x256xf32>
    %c3_54 = arith.constant 3 : index
    %c2_55 = arith.constant 2 : index
    %91 = memref.load %arg2[%c3_54, %c2_55] : memref<8x4xf32, #tpu.memory_space<smem>>
    %92 = vector.broadcast %91 : f32 to vector<2x256xf32>
    %93 = arith.mulf %5, %92 : vector<2x256xf32>
    %94 = arith.addf %90, %93 : vector<2x256xf32>
    %c3_56 = arith.constant 3 : index
    %c3_57 = arith.constant 3 : index
    %95 = memref.load %arg2[%c3_56, %c3_57] : memref<8x4xf32, #tpu.memory_space<smem>>
    %96 = vector.broadcast %95 : f32 to vector<2x256xf32>
    %97 = arith.mulf %7, %96 : vector<2x256xf32>
    %98 = arith.addf %94, %97 : vector<2x256xf32>
    %c3_58 = arith.constant 3 : index
    %99 = memref.load %arg3[%c3_58] : memref<8xf32, #tpu.memory_space<smem>>
    %100 = vector.broadcast %99 : f32 to vector<2x256xf32>
    %101 = arith.addf %98, %100 : vector<2x256xf32>
    %cst_59 = arith.constant 0.000000e+00 : f32
    %102 = vector.broadcast %cst_59 : f32 to vector<2x256xf32>
    %103 = arith.maximumf %101, %102 : vector<2x256xf32>
    %104 = arith.truncf %103 : vector<2x256xf32> to vector<2x256xbf16>
    %c3_60 = arith.constant 3 : index
    %c0_61 = arith.constant 0 : index
    %c0_62 = arith.constant 0 : index
    %105 = vector.load %arg4[%c3_60, %c0_61, %c0_62] : memref<8x256x64xbf16, #tpu.memory_space<vmem>>, vector<1x256x64xbf16>
    %106 = vector.shape_cast %105 : vector<1x256x64xbf16> to vector<256x64xbf16>
    %cst_63 = arith.constant dense<0.000000e+00> : vector<2x64xf32>
    %107 = tpu.matmul %104, %106, %cst_63 {dimension_numbers = #tpu.dot_dimension_numbers<[1], [0], [0], [1], [0, 0, 1, 1], [], []>} : vector<2x256xbf16>, vector<256x64xbf16>, vector<2x64xf32> -> vector<2x64xf32>
    %108 = arith.addf %83, %107 : vector<2x64xf32>
    %c4 = arith.constant 4 : index
    %c0_64 = arith.constant 0 : index
    %109 = memref.load %arg2[%c4, %c0_64] : memref<8x4xf32, #tpu.memory_space<smem>>
    %110 = vector.broadcast %109 : f32 to vector<2x256xf32>
    %111 = arith.mulf %1, %110 : vector<2x256xf32>
    %c4_65 = arith.constant 4 : index
    %c1_66 = arith.constant 1 : index
    %112 = memref.load %arg2[%c4_65, %c1_66] : memref<8x4xf32, #tpu.memory_space<smem>>
    %113 = vector.broadcast %112 : f32 to vector<2x256xf32>
    %114 = arith.mulf %3, %113 : vector<2x256xf32>
    %115 = arith.addf %111, %114 : vector<2x256xf32>
    %c4_67 = arith.constant 4 : index
    %c2_68 = arith.constant 2 : index
    %116 = memref.load %arg2[%c4_67, %c2_68] : memref<8x4xf32, #tpu.memory_space<smem>>
    %117 = vector.broadcast %116 : f32 to vector<2x256xf32>
    %118 = arith.mulf %5, %117 : vector<2x256xf32>
    %119 = arith.addf %115, %118 : vector<2x256xf32>
    %c4_69 = arith.constant 4 : index
    %c3_70 = arith.constant 3 : index
    %120 = memref.load %arg2[%c4_69, %c3_70] : memref<8x4xf32, #tpu.memory_space<smem>>
    %121 = vector.broadcast %120 : f32 to vector<2x256xf32>
    %122 = arith.mulf %7, %121 : vector<2x256xf32>
    %123 = arith.addf %119, %122 : vector<2x256xf32>
    %c4_71 = arith.constant 4 : index
    %124 = memref.load %arg3[%c4_71] : memref<8xf32, #tpu.memory_space<smem>>
    %125 = vector.broadcast %124 : f32 to vector<2x256xf32>
    %126 = arith.addf %123, %125 : vector<2x256xf32>
    %cst_72 = arith.constant 0.000000e+00 : f32
    %127 = vector.broadcast %cst_72 : f32 to vector<2x256xf32>
    %128 = arith.maximumf %126, %127 : vector<2x256xf32>
    %129 = arith.truncf %128 : vector<2x256xf32> to vector<2x256xbf16>
    %c4_73 = arith.constant 4 : index
    %c0_74 = arith.constant 0 : index
    %c0_75 = arith.constant 0 : index
    %130 = vector.load %arg4[%c4_73, %c0_74, %c0_75] : memref<8x256x64xbf16, #tpu.memory_space<vmem>>, vector<1x256x64xbf16>
    %131 = vector.shape_cast %130 : vector<1x256x64xbf16> to vector<256x64xbf16>
    %cst_76 = arith.constant dense<0.000000e+00> : vector<2x64xf32>
    %132 = tpu.matmul %129, %131, %cst_76 {dimension_numbers = #tpu.dot_dimension_numbers<[1], [0], [0], [1], [0, 0, 1, 1], [], []>} : vector<2x256xbf16>, vector<256x64xbf16>, vector<2x64xf32> -> vector<2x64xf32>
    %133 = arith.addf %108, %132 : vector<2x64xf32>
    %c5 = arith.constant 5 : index
    %c0_77 = arith.constant 0 : index
    %134 = memref.load %arg2[%c5, %c0_77] : memref<8x4xf32, #tpu.memory_space<smem>>
    %135 = vector.broadcast %134 : f32 to vector<2x256xf32>
    %136 = arith.mulf %1, %135 : vector<2x256xf32>
    %c5_78 = arith.constant 5 : index
    %c1_79 = arith.constant 1 : index
    %137 = memref.load %arg2[%c5_78, %c1_79] : memref<8x4xf32, #tpu.memory_space<smem>>
    %138 = vector.broadcast %137 : f32 to vector<2x256xf32>
    %139 = arith.mulf %3, %138 : vector<2x256xf32>
    %140 = arith.addf %136, %139 : vector<2x256xf32>
    %c5_80 = arith.constant 5 : index
    %c2_81 = arith.constant 2 : index
    %141 = memref.load %arg2[%c5_80, %c2_81] : memref<8x4xf32, #tpu.memory_space<smem>>
    %142 = vector.broadcast %141 : f32 to vector<2x256xf32>
    %143 = arith.mulf %5, %142 : vector<2x256xf32>
    %144 = arith.addf %140, %143 : vector<2x256xf32>
    %c5_82 = arith.constant 5 : index
    %c3_83 = arith.constant 3 : index
    %145 = memref.load %arg2[%c5_82, %c3_83] : memref<8x4xf32, #tpu.memory_space<smem>>
    %146 = vector.broadcast %145 : f32 to vector<2x256xf32>
    %147 = arith.mulf %7, %146 : vector<2x256xf32>
    %148 = arith.addf %144, %147 : vector<2x256xf32>
    %c5_84 = arith.constant 5 : index
    %149 = memref.load %arg3[%c5_84] : memref<8xf32, #tpu.memory_space<smem>>
    %150 = vector.broadcast %149 : f32 to vector<2x256xf32>
    %151 = arith.addf %148, %150 : vector<2x256xf32>
    %cst_85 = arith.constant 0.000000e+00 : f32
    %152 = vector.broadcast %cst_85 : f32 to vector<2x256xf32>
    %153 = arith.maximumf %151, %152 : vector<2x256xf32>
    %154 = arith.truncf %153 : vector<2x256xf32> to vector<2x256xbf16>
    %c5_86 = arith.constant 5 : index
    %c0_87 = arith.constant 0 : index
    %c0_88 = arith.constant 0 : index
    %155 = vector.load %arg4[%c5_86, %c0_87, %c0_88] : memref<8x256x64xbf16, #tpu.memory_space<vmem>>, vector<1x256x64xbf16>
    %156 = vector.shape_cast %155 : vector<1x256x64xbf16> to vector<256x64xbf16>
    %cst_89 = arith.constant dense<0.000000e+00> : vector<2x64xf32>
    %157 = tpu.matmul %154, %156, %cst_89 {dimension_numbers = #tpu.dot_dimension_numbers<[1], [0], [0], [1], [0, 0, 1, 1], [], []>} : vector<2x256xbf16>, vector<256x64xbf16>, vector<2x64xf32> -> vector<2x64xf32>
    %158 = arith.addf %133, %157 : vector<2x64xf32>
    %c6 = arith.constant 6 : index
    %c0_90 = arith.constant 0 : index
    %159 = memref.load %arg2[%c6, %c0_90] : memref<8x4xf32, #tpu.memory_space<smem>>
    %160 = vector.broadcast %159 : f32 to vector<2x256xf32>
    %161 = arith.mulf %1, %160 : vector<2x256xf32>
    %c6_91 = arith.constant 6 : index
    %c1_92 = arith.constant 1 : index
    %162 = memref.load %arg2[%c6_91, %c1_92] : memref<8x4xf32, #tpu.memory_space<smem>>
    %163 = vector.broadcast %162 : f32 to vector<2x256xf32>
    %164 = arith.mulf %3, %163 : vector<2x256xf32>
    %165 = arith.addf %161, %164 : vector<2x256xf32>
    %c6_93 = arith.constant 6 : index
    %c2_94 = arith.constant 2 : index
    %166 = memref.load %arg2[%c6_93, %c2_94] : memref<8x4xf32, #tpu.memory_space<smem>>
    %167 = vector.broadcast %166 : f32 to vector<2x256xf32>
    %168 = arith.mulf %5, %167 : vector<2x256xf32>
    %169 = arith.addf %165, %168 : vector<2x256xf32>
    %c6_95 = arith.constant 6 : index
    %c3_96 = arith.constant 3 : index
    %170 = memref.load %arg2[%c6_95, %c3_96] : memref<8x4xf32, #tpu.memory_space<smem>>
    %171 = vector.broadcast %170 : f32 to vector<2x256xf32>
    %172 = arith.mulf %7, %171 : vector<2x256xf32>
    %173 = arith.addf %169, %172 : vector<2x256xf32>
    %c6_97 = arith.constant 6 : index
    %174 = memref.load %arg3[%c6_97] : memref<8xf32, #tpu.memory_space<smem>>
    %175 = vector.broadcast %174 : f32 to vector<2x256xf32>
    %176 = arith.addf %173, %175 : vector<2x256xf32>
    %cst_98 = arith.constant 0.000000e+00 : f32
    %177 = vector.broadcast %cst_98 : f32 to vector<2x256xf32>
    %178 = arith.maximumf %176, %177 : vector<2x256xf32>
    %179 = arith.truncf %178 : vector<2x256xf32> to vector<2x256xbf16>
    %c6_99 = arith.constant 6 : index
    %c0_100 = arith.constant 0 : index
    %c0_101 = arith.constant 0 : index
    %180 = vector.load %arg4[%c6_99, %c0_100, %c0_101] : memref<8x256x64xbf16, #tpu.memory_space<vmem>>, vector<1x256x64xbf16>
    %181 = vector.shape_cast %180 : vector<1x256x64xbf16> to vector<256x64xbf16>
    %cst_102 = arith.constant dense<0.000000e+00> : vector<2x64xf32>
    %182 = tpu.matmul %179, %181, %cst_102 {dimension_numbers = #tpu.dot_dimension_numbers<[1], [0], [0], [1], [0, 0, 1, 1], [], []>} : vector<2x256xbf16>, vector<256x64xbf16>, vector<2x64xf32> -> vector<2x64xf32>
    %183 = arith.addf %158, %182 : vector<2x64xf32>
    %c7 = arith.constant 7 : index
    %c0_103 = arith.constant 0 : index
    %184 = memref.load %arg2[%c7, %c0_103] : memref<8x4xf32, #tpu.memory_space<smem>>
    %185 = vector.broadcast %184 : f32 to vector<2x256xf32>
    %186 = arith.mulf %1, %185 : vector<2x256xf32>
    %c7_104 = arith.constant 7 : index
    %c1_105 = arith.constant 1 : index
    %187 = memref.load %arg2[%c7_104, %c1_105] : memref<8x4xf32, #tpu.memory_space<smem>>
    %188 = vector.broadcast %187 : f32 to vector<2x256xf32>
    %189 = arith.mulf %3, %188 : vector<2x256xf32>
    %190 = arith.addf %186, %189 : vector<2x256xf32>
    %c7_106 = arith.constant 7 : index
    %c2_107 = arith.constant 2 : index
    %191 = memref.load %arg2[%c7_106, %c2_107] : memref<8x4xf32, #tpu.memory_space<smem>>
    %192 = vector.broadcast %191 : f32 to vector<2x256xf32>
    %193 = arith.mulf %5, %192 : vector<2x256xf32>
    %194 = arith.addf %190, %193 : vector<2x256xf32>
    %c7_108 = arith.constant 7 : index
    %c3_109 = arith.constant 3 : index
    %195 = memref.load %arg2[%c7_108, %c3_109] : memref<8x4xf32, #tpu.memory_space<smem>>
    %196 = vector.broadcast %195 : f32 to vector<2x256xf32>
    %197 = arith.mulf %7, %196 : vector<2x256xf32>
    %198 = arith.addf %194, %197 : vector<2x256xf32>
    %c7_110 = arith.constant 7 : index
    %199 = memref.load %arg3[%c7_110] : memref<8xf32, #tpu.memory_space<smem>>
    %200 = vector.broadcast %199 : f32 to vector<2x256xf32>
    %201 = arith.addf %198, %200 : vector<2x256xf32>
    %cst_111 = arith.constant 0.000000e+00 : f32
    %202 = vector.broadcast %cst_111 : f32 to vector<2x256xf32>
    %203 = arith.maximumf %201, %202 : vector<2x256xf32>
    %204 = arith.truncf %203 : vector<2x256xf32> to vector<2x256xbf16>
    %c7_112 = arith.constant 7 : index
    %c0_113 = arith.constant 0 : index
    %c0_114 = arith.constant 0 : index
    %205 = vector.load %arg4[%c7_112, %c0_113, %c0_114] : memref<8x256x64xbf16, #tpu.memory_space<vmem>>, vector<1x256x64xbf16>
    %206 = vector.shape_cast %205 : vector<1x256x64xbf16> to vector<256x64xbf16>
    %cst_115 = arith.constant dense<0.000000e+00> : vector<2x64xf32>
    %207 = tpu.matmul %204, %206, %cst_115 {dimension_numbers = #tpu.dot_dimension_numbers<[1], [0], [0], [1], [0, 0, 1, 1], [], []>} : vector<2x256xbf16>, vector<256x64xbf16>, vector<2x64xf32> -> vector<2x64xf32>
    %208 = arith.addf %183, %207 : vector<2x64xf32>
    %c0_116 = arith.constant 0 : index
    %c0_117 = arith.constant 0 : index
    %209 = vector.load %arg5[%c0_116, %c0_117] : memref<1x64xf32, #tpu.memory_space<vmem>>, vector<1x64xf32>
    %210 = vector.broadcast %209 : vector<1x64xf32> to vector<2x64xf32>
    %211 = arith.addf %208, %210 : vector<2x64xf32>
    %cst_118 = arith.constant 0.000000e+00 : f32
    %212 = vector.broadcast %cst_118 : f32 to vector<2x64xf32>
    %213 = arith.maximumf %211, %212 : vector<2x64xf32>
    %214 = arith.truncf %213 : vector<2x64xf32> to vector<2x64xbf16>
    %c0_119 = arith.constant 0 : index
    %c0_120 = arith.constant 0 : index
    %215 = vector.load %arg6[%c0_119, %c0_120] : memref<64x128xbf16, #tpu.memory_space<vmem>>, vector<64x128xbf16>
    %cst_121 = arith.constant dense<0.000000e+00> : vector<2x128xf32>
    %216 = tpu.matmul %214, %215, %cst_121 {dimension_numbers = #tpu.dot_dimension_numbers<[1], [0], [0], [1], [0, 0, 1, 1], [], []>} : vector<2x64xbf16>, vector<64x128xbf16>, vector<2x128xf32> -> vector<2x128xf32>
    %c0_122 = arith.constant 0 : index
    %c0_123 = arith.constant 0 : index
    %217 = vector.load %arg7[%c0_122, %c0_123] : memref<1x128xf32, #tpu.memory_space<vmem>>, vector<1x128xf32>
    %218 = vector.broadcast %217 : vector<1x128xf32> to vector<2x128xf32>
    %219 = arith.addf %216, %218 : vector<2x128xf32>
    %c0_124 = arith.constant 0 : index
    %c0_125 = arith.constant 0 : index
    %220 = vector.load %arg8[%c0_124, %c0_125] : memref<2x128xf32, #tpu.memory_space<vmem>>, vector<2x128xf32>
    tpu.vector_store %arg8[%c0_124, %c0_125], %219 {strides = array<i32>} : memref<2x128xf32, #tpu.memory_space<vmem>>, vector<2x128xf32>,
    return
  }
  func.func @transform_0(%arg0: i32) -> (i32, i32, i32) {
    %c0_i32 = arith.constant 0 : i32
    %c0_i32_0 = arith.constant 0 : i32
    %c0_i32_1 = arith.constant 0 : i32
    return %arg0, %c0_i32, %c0_i32_0 : i32, i32, i32
  }
  func.func @transform_1(%arg0: i32) -> (i32, i32) {
    %c0_i32 = arith.constant 0 : i32
    %c0_i32_0 = arith.constant 0 : i32
    %c0_i32_1 = arith.constant 0 : i32
    return %c0_i32, %c0_i32_0 : i32, i32
  }
  func.func @transform_2(%arg0: i32) -> i32 {
    %c0_i32 = arith.constant 0 : i32
    %c0_i32_0 = arith.constant 0 : i32
    return %c0_i32 : i32
  }
  func.func @transform_3(%arg0: i32) -> (i32, i32, i32) {
    %c0_i32 = arith.constant 0 : i32
    %c0_i32_0 = arith.constant 0 : i32
    %c0_i32_1 = arith.constant 0 : i32
    %c0_i32_2 = arith.constant 0 : i32
    return %c0_i32, %c0_i32_0, %c0_i32_1 : i32, i32, i32
  }
  func.func @transform_4(%arg0: i32) -> (i32, i32) {
    %c0_i32 = arith.constant 0 : i32
    %c0_i32_0 = arith.constant 0 : i32
    %c0_i32_1 = arith.constant 0 : i32
    return %c0_i32, %c0_i32_0 : i32, i32
  }
  func.func @transform_5(%arg0: i32) -> (i32, i32) {
    %c0_i32 = arith.constant 0 : i32
    %c0_i32_0 = arith.constant 0 : i32
    %c0_i32_1 = arith.constant 0 : i32
    return %c0_i32, %c0_i32_0 : i32, i32
  }
  func.func @transform_6(%arg0: i32) -> (i32, i32) {
    %c0_i32 = arith.constant 0 : i32
    %c0_i32_0 = arith.constant 0 : i32
    %c0_i32_1 = arith.constant 0 : i32
    return %c0_i32, %c0_i32_0 : i32, i32
  }
  func.func @transform_7(%arg0: i32) -> (i32, i32) {
    %c0_i32 = arith.constant 0 : i32
    %c0_i32_0 = arith.constant 0 : i32
    return %arg0, %c0_i32 : i32, i32
  }
}

</mosaic_0001>

<bundles_post_ra>
// kernel: classifier_forward.1
= control target key start
LH: loop header
LB: loop body
LE: loop exit
PB: predicated region body
PF: predicated region fallthrough
CT: control target
= control target key end

     0   :  { %12 = vsyncpa [#allocation4], 0  ;;  %s3618_s0 = inlined_call_operand.vmem [shape: f32[2,4,256], index: 0, kind: input, shape index: {}]   ;;  %s3619_s1 = inlined_call_operand.vmem [shape: f32[8,4], index: 1, kind: input, shape index: {}]   ;;  %s3620_s2 = inlined_call_operand.vmem [shape: f32[8], index: 2, kind: input, shape index: {}]   ;;  %s3621_s3 = inlined_call_operand.vmem [shape: bf16[8,256,64], index: 3, kind: input, shape index: {}]   ;;  %s3622_s4 = inlined_call_operand.vmem [shape: f32[1,64], index: 4, kind: input, shape index: {}]   ;;  %s3623_s5 = inlined_call_operand.vmem [shape: bf16[64,128], index: 5, kind: input, shape index: {}]   ;;  %s3624_s6 = inlined_call_operand.vmem [shape: f32[1,128], index: 6, kind: input, shape index: {}]   ;;  %s3625_s7 = inlined_call_operand.hbm [shape: f32[2,128], index: 7, kind: output, shape index: {}]  }
   0x1   :  { %13 = vsyncpa [#allocation6], 0 }
   0x2   :  { %14 = vsyncpa [#allocation3], 0  ;;  %s22_s26 = sshll.u32 %s3619_s1, 4  ;;  %s31_s29 = sshll.u32 %s3620_s2, 4  ;;  %s23_s26 = int_to_ptr.vmem [resolvable:$true] %s22_s26  ;;  %s32_s29 = int_to_ptr.vmem [resolvable:$true] %s31_s29 }
   0x3   :  { %s2846_s30 = smov [#allocation2]   ;;  %s2847_s8 = smov [#allocation5]  }
   0x4   :  { %25 = dma.vmem_to_smem %s23_s26, 128, %s2846_s30, [#allocation4]  }
   0x5   :  { %34 = dma.vmem_to_smem %s32_s29, 16, %s2847_s8, [#allocation6]  }
   0x6   :  { %2840 = dma.done.wait [#allocation4], 128  }
   0x7   :  { %2841 = vsyncadd [#allocation4], 4294967168 }
   0x8   :  { %2842 = dma.done.wait [#allocation6], 16  }
   0x9   :  { %2843 = vsyncadd [#allocation6], 4294967280 }
   0xa   :  { %51 = sfence }
   0xb   :  { %v2678_v0 = vld [vmem:[%s3621_s3 + $0xb8] sm:$0xff]  ;;  %s2904_s13 = sld [smem:[#allocation2]]  ;;  %v2677_v4 = vld [vmem:[%s3621_s3 + $0xb0] sm:$0xff]  ;;  %v2676_v8 = vld [vmem:[%s3621_s3 + $0xa8] sm:$0xff]  ;;  %vm226_vm0 = vcmask 1041409   ;;  %vm1821_vm1 = vcmask 523264  }
   0xc   :  { %v2686_v1 = vld [vmem:[%s3621_s3 + $0xf8] sm:$0xff]  ;;  %s2909_s16 = sld [smem:[#allocation2 + $0x1]]  ;;  %330 = vmatpush.bf16.msra.mxu0 %v2678_v0  ;;  %v2685_v5 = vld [vmem:[%s3621_s3 + $0xf0] sm:$0xff]  ;;  %v2684_v9 = vld [vmem:[%s3621_s3 + $0xe8] sm:$0xff] }
   0xd   :  { %v2662_v2 = vld [vmem:[%s3621_s3 + $0x38] sm:$0xff]  ;;  %343 = vmatpush.bf16.msra.mxu1 %v2686_v1  ;;  %s2917_s21 = sld [smem:[#allocation2 + $0x2]]  ;;  %v2661_v6 = vld [vmem:[%s3621_s3 + $0x30] sm:$0xff]  ;;  %v2660_v10 = vld [vmem:[%s3621_s3 + $0x28] sm:$0xff] }
   0xe   :  { %v2670_v3 = vld [vmem:[%s3621_s3 + $0x78] sm:$0xff]  ;;  %468 = vmatpush.bf16.msra.mxu2 %v2662_v2  ;;  %v2669_v7 = vld [vmem:[%s3621_s3 + $0x70] sm:$0xff]  ;;  %s2925_s26 = sld [smem:[#allocation2 + $0x3]]  ;;  %v2668_v11 = vld [vmem:[%s3621_s3 + $0x68] sm:$0xff] }
   0xf   :  { %481 = vmatpush.bf16.msra.mxu3 %v2670_v3  ;;  %s2927_s27 = sld [smem:[#allocation5]]  ;;  %v2675_v12 = vld [vmem:[%s3621_s3 + $0xa0] sm:$0xff]  ;;  %v2674_v16 = vld [vmem:[%s3621_s3 + $0x98] sm:$0xff]  ;;  %v2673_v29 = vld [vmem:[%s3621_s3 + $0x90] sm:$0xff] }
  0x10   :  { %s2929_s28 = sld [smem:[#allocation2 + $0x80]]  ;;  %331 = vmatpush.bf16.msra.mxu0 %v2677_v4  ;;  %v2683_v13 = vld [vmem:[%s3621_s3 + $0xe0] sm:$0xff]  ;;  %v2682_v17 = vld [vmem:[%s3621_s3 + $0xd8] sm:$0xff]  ;;  %v2681_v30 = vld [vmem:[%s3621_s3 + $0xd0] sm:$0xff] }
  0x11   :  { %344 = vmatpush.bf16.msra.mxu1 %v2685_v5  ;;  %s2937_s10 = sld [smem:[#allocation2 + $0x81]]  ;;  %v2659_v14 = vld [vmem:[%s3621_s3 + $0x20] sm:$0xff]  ;;  %v2658_v18 = vld [vmem:[%s3621_s3 + $0x18] sm:$0xff]  ;;  %v69_v20 = vstv %s2904_s13  ;;  %v3010_v32 = vld [vmem:[%s3618_s0 + $0x8] ss:$4 sm:$0x3] }
  0x12   :  { %469 = vmatpush.bf16.msra.mxu2 %v2661_v6  ;;  %s2945_s14 = sld [smem:[#allocation2 + $0x82]]  ;;  %v2667_v15 = vld [vmem:[%s3621_s3 + $0x60] sm:$0xff]  ;;  %v2666_v19 = vld [vmem:[%s3621_s3 + $0x58] sm:$0xff]  ;;  %v73_v21 = vstv %s2909_s16  ;;  %v2657_v35 = vld [vmem:[%s3621_s3 + $0x10] sm:$0xff]  ;;  %v71_v40 = vmul.f32 %v3010_v32, %v69_v20 }
  0x13   :  { %482 = vmatpush.bf16.msra.mxu3 %v2669_v7  ;;  %s2947_s15 = sld [smem:[#allocation2 + $0x83]]  ;;  %v79_v22 = vstv %s2917_s21  ;;  %v3005_v31 = vld [vmem:[%s3618_s0] ss:$4 sm:$0x3]  ;;  %v2665_v36 = vld [vmem:[%s3621_s3 + $0x50] sm:$0xff]  ;;  %v2672_v63 = vld [vmem:[%s3621_s3 + $0x88] sm:$0xff] }
  0x14   :  { %s2949_s17 = sld [smem:[#allocation5 + $0x1]]  ;;  %332 = vmatpush.bf16.msra.mxu0 %v2676_v8  ;;  %v85_v23 = vstv %s2925_s26  ;;  %v3023_v37 = vld [vmem:[%s3618_s0 + $0x1] ss:$4 sm:$0x3]  ;;  %v70_v39 = vmul.f32 %v69_v20, %v3005_v31  ;;  %v2680_v0 = vld [vmem:[%s3621_s3 + $0xc8] sm:$0xff] }
  0x15   :  { %345 = vmatpush.bf16.msra.mxu1 %v2684_v9  ;;  %s2957_s23 = sld [smem:[#allocation2 + $0x180]]  ;;  %v91_v25 = vstv %s2927_s27  ;;  %v3028_v38 = vld [vmem:[%s3618_s0 + $0x9] ss:$4 sm:$0x3]  ;;  %v74_v45 = vmul.f32 %v3023_v37, %v73_v21  ;;  %v2679_v20 = vld [vmem:[%s3621_s3 + $0xc0] sm:$0xff] }
  0x16   :  { %470 = vmatpush.bf16.msra.mxu2 %v2660_v10  ;;  %s2965_s8 = sld [smem:[#allocation2 + $0x181]]  ;;  %v143_v24 = vstv %s2929_s28  ;;  %v3037_v43 = vld [vmem:[%s3618_s0 + $0x2] ss:$4 sm:$0x3]  ;;  %v75_v46 = vmul.f32 %v3028_v38, %v73_v21  ;;  %v2656_v5 = vld [vmem:[%s3621_s3 + $0x8] sm:$0xff] }
  0x17   :  { %483 = vmatpush.bf16.msra.mxu3 %v2668_v11  ;;  %s2970_s11 = sld [smem:[#allocation2 + $0x182]]  ;;  %v147_v26 = vstv %s2937_s10  ;;  %v144_v41 = vmul.f32 %v143_v24, %v3005_v31  ;;  %v145_v42 = vmul.f32 %v3010_v32, %v143_v24  ;;  %v3042_v44 = vld [vmem:[%s3618_s0 + $0xa] ss:$4 sm:$0x3]  ;;  %v80_v51 = vmul.f32 %v3037_v43, %v79_v22 }
  0x18   :  { %s2982_s24 = sld [smem:[#allocation2 + $0x183]]  ;;  %333 = vmatpush.bf16.msra.mxu0 %v2675_v12  ;;  %v153_v27 = vstv %s2945_s14  ;;  %v148_v47 = vmul.f32 %v3023_v37, %v147_v26  ;;  %v3051_v49 = vld [vmem:[%s3618_s0 + $0x3] ss:$4 sm:$0x3]  ;;  %v81_v52 = vmul.f32 %v3042_v44, %v79_v22  ;;  %v149_v53 = vmul.f32 %v3028_v38, %v147_v26  ;;  %v2664_v6 = vld [vmem:[%s3621_s3 + $0x48] sm:$0xff] }
  0x19   :  { %346 = vmatpush.bf16.msra.mxu1 %v2683_v13  ;;  %s2988_s25 = sld [smem:[#allocation5 + $0x3]]  ;;  %v159_v28 = vstv %s2947_s15  ;;  %v3056_v50 = vld [vmem:[%s3618_s0 + $0xb] ss:$4 sm:$0x3]  ;;  %v76_v55 = vadd.f32 %v74_v45, %v70_v39  ;;  %v77_v56 = vadd.f32 %v75_v46, %v71_v40  ;;  %v86_v57 = vmul.f32 %v3051_v49, %v85_v23  ;;  %v2655_v26 = vld [vmem:[%s3621_s3] sm:$0xff] }
  0x1a   :  { %471 = vmatpush.bf16.msra.mxu2 %v2659_v14  ;;  %s2994_s29 = sld [smem:[#allocation2 + $0x100]]  ;;  %v165_v33 = vstv %s2949_s17  ;;  %v87_v58 = vmul.f32 %v3056_v50, %v85_v23  ;;  %v150_v59 = vadd.f32 %v148_v47, %v144_v41  ;;  %v151_v60 = vadd.f32 %v149_v53, %v145_v42  ;;  %v2710_v42 = vld [vmem:[%s3621_s3 + $0x1b8] sm:$0xff] }
  0x1b   :  { %484 = vmatpush.bf16.msra.mxu3 %v2667_v15  ;;  %v709_v34 = vstv %s2957_s23  ;;  %v154_v61 = vmul.f32 %v3037_v43, %v153_v27  ;;  %v155_v62 = vmul.f32 %v3042_v44, %v153_v27  ;;  %v82_v1 = vadd.f32 %v80_v51, %v76_v55  ;;  %s3086_s2 = sld [smem:[#allocation2 + $0x102]]  ;;  %v2663_v27 = vld [vmem:[%s3621_s3 + $0x40] sm:$0xff] }
  0x1c   :  { %334 = vmatpush.bf16.msra.mxu0 %v2674_v16  ;;  %v713_v48 = vstv %s2965_s8  ;;  %s3064_s8 = sld [smem:[#allocation2 + $0x101]]  ;;  %v83_v2 = vadd.f32 %v81_v52, %v77_v56  ;;  %v160_v3 = vmul.f32 %v3051_v49, %v159_v28  ;;  %v161_v9 = vmul.f32 %v3056_v50, %v159_v28 }
  0x1d   :  { %347 = vmatpush.bf16.msra.mxu1 %v2682_v17  ;;  %v719_v54 = vstv %s2970_s11  ;;  %v156_v7 = vadd.f32 %v154_v61, %v150_v59  ;;  %v157_v8 = vadd.f32 %v155_v62, %v151_v60  ;;  %v88_v11 = vadd.f32 %v86_v57, %v82_v1  ;;  %s3090_s18 = sld [smem:[#allocation2 + $0x103]]  ;;  %v2693_v59 = vld [vmem:[%s3621_s3 + $0x130] sm:$0xff] }
  0x1e   :  { %472 = vmatpush.bf16.msra.mxu2 %v2658_v18  ;;  %v725_v4 = vstv %s2982_s24  ;;  %v89_v12 = vadd.f32 %v87_v58, %v83_v2  ;;  %v710_v13 = vmul.f32 %v709_v34, %v3005_v31  ;;  %v711_v14 = vmul.f32 %v3010_v32, %v709_v34  ;;  %v2694_v34 = vld [vmem:[%s3621_s3 + $0x138] sm:$0xff]  ;;  %v2701_v60 = vld [vmem:[%s3621_s3 + $0x170] sm:$0xff]  ;;  %s3138_s19 = sld [smem:[#allocation5 + $0x2]] }
  0x1f   :  { %485 = vmatpush.bf16.msra.mxu3 %v2666_v19  ;;  %v731_v10 = vstv %s2988_s25  ;;  %v162_v15 = vadd.f32 %v160_v3, %v156_v7  ;;  %v163_v16 = vadd.f32 %v161_v9, %v157_v8  ;;  %v714_v17 = vmul.f32 %v3023_v37, %v713_v48  ;;  %v2671_v19 = vld [vmem:[%s3621_s3 + $0x80] sm:$0xff]  ;;  %v2709_v1 = vld [vmem:[%s3621_s3 + $0x1b0] sm:$0xff]  ;;  %s3147_s30 = sld [smem:[#allocation2 + $0x200]] }
  0x20   :  { %335 = vmatpush.bf16.msra.mxu0 %v2673_v29  ;;  %v715_v18 = vmul.f32 %v3028_v38, %v713_v48  ;;  %v92_v21 = vadd.f32 %v91_v25, %v88_v11  ;;  %v93_v22 = vadd.f32 %v91_v25, %v89_v12  ;;  %v720_v23 = vmul.f32 %v3037_v43, %v719_v54  ;;  %v2717_v2 = vld [vmem:[%s3621_s3 + $0x1f0] sm:$0xff]  ;;  %s3173_s24 = sld [smem:[#allocation2 + $0x201]] }
  0x21   :  { %348 = vmatpush.bf16.msra.mxu1 %v2681_v30  ;;  %v495_v24 = vstv %s2994_s29  ;;  %v166_v28 = vadd.f32 %v165_v33, %v162_v15  ;;  %v167_v29 = vadd.f32 %v165_v33, %v163_v16  ;;  %v716_v25 = vadd.f32 %v714_v17, %v710_v13  ;;  %v2718_v33 = vld [vmem:[%s3621_s3 + $0x1f8] sm:$0xff]  ;;  %v2692_v17 = vld [vmem:[%s3621_s3 + $0x128] sm:$0xff]  ;;  %s3197_s23 = sld [smem:[#allocation2 + $0x202]] }
  0x22   :  { %473 = vmatpush.bf16.msra.mxu2 %v2657_v35  ;;  %v499_v30 = vstv %s3064_s8  ;;  %v2702_v35 = vld [vmem:[%s3621_s3 + $0x178] sm:$0xff]  ;;  %v95_v39 = vmax.f32 %v93_v22, 0.0  ;;  %v717_v40 = vadd.f32 %v715_v18, %v711_v14  ;;  %v721_v41 = vmul.f32 %v3042_v44, %v719_v54  ;;  %v2700_v18 = vld [vmem:[%s3621_s3 + $0x168] sm:$0xff]  ;;  %s3205_s25 = sld [smem:[#allocation2 + $0x203]] }
  0x23   :  { %486 = vmatpush.bf16.msra.mxu3 %v2665_v36  ;;  %v94_v36 = vmax.f32 %v92_v21, 0.0  ;;  %v168_v45 = vmax.f32 %v166_v28, 0.0  ;;  %v169_v46 = vmax.f32 %v167_v29, 0.0  ;;  %v722_v47 = vadd.f32 %v720_v23, %v716_v25  ;;  %v2708_v23 = vld [vmem:[%s3621_s3 + $0x1a8] sm:$0xff]  ;;  %s3238_s11 = sld [smem:[#allocation5 + $0x4]] }
  0x24   :  { %336 = vmatpush.bf16.msra.mxu0 %v2672_v63  ;;  %v726_v48 = vmul.f32 %v3051_v49, %v725_v4  ;;  %v100_v52 = vperm.slane %v95_v39, 0  ;;  %v101_v54 = vperm.slane %v95_v39, 1  ;;  %v511_v7 = vstv %s3090_s18  ;;  %s3249_s29 = sld [smem:[#allocation2 + $0x280]] }
  0x25   :  { %349 = vmatpush.bf16.msra.mxu1 %v2680_v0  ;;  %v98_v51 = vperm.slane %v94_v36, 0  ;;  %v99_v53 = vperm.slane %v94_v36, 1  ;;  %v172_v55 = vperm.slane %v168_v45, 0  ;;  %v174_v56 = vperm.slane %v169_v46, 0  ;;  %s3255_s10 = sld [smem:[#allocation2 + $0x281]] }
  0x26   :  { %474 = vmatpush.bf16.msra.mxu2 %v2656_v5  ;;  %v173_v57 = vperm.slane %v168_v45, 1  ;;  %v175_v58 = vperm.slane %v169_v46, 1  ;;  %v108_v62 = vpack.c.bf16 %v100_v52, %v100_v52  ;;  %v505_v0 = vstv %s3086_s2  ;;  %v2715_v52 = vld [vmem:[%s3621_s3 + $0x1e0] sm:$0xff]  ;;  %s3257_s14 = sld [smem:[#allocation2 + $0x282]] }
  0x27   :  { %487 = vmatpush.bf16.msra.mxu3 %v2664_v6  ;;  %v106_v61 = vpack.c.bf16 %v98_v51, %v98_v51  ;;  %v107_v63 = vpack.c.bf16 %v99_v53, %v99_v53  ;;  %v109_v3 = vpack.c.bf16 %v101_v54, %v101_v54  ;;  %v180_v5 = vpack.c.bf16 %v172_v55, %v172_v55  ;;  %v2707_v51 = vld [vmem:[%s3621_s3 + $0x1a0] sm:$0xff]  ;;  %s3299_s26 = sld [smem:[#allocation2 + $0x283]] }
  0x28   :  { %337 = vmatpush.bf16.msra.mxu0 %v2671_v19  ;;  %v182_v6 = vpack.c.bf16 %v174_v56, %v174_v56  ;;  %v362_v9 = vunpack.c.l.b16 %v108_v62  ;;  %v181_v12 = vpack.c.bf16 %v173_v57, %v173_v57  ;;  %v183_v16 = vpack.c.bf16 %v175_v58, %v175_v58  ;;  %s3308_s17 = sld [smem:[#allocation5 + $0x5]] }
  0x29   :  { %350 = vmatpush.bf16.msra.mxu1 %v2679_v20  ;;  %v360_v8 = vunpack.c.l.b16 %v106_v61  ;;  %v361_v11 = vunpack.c.l.b16 %v107_v63  ;;  %v363_v13 = vunpack.c.l.b16 %v109_v3  ;;  %v221_v14 = vunpack.c.l.b16 %v180_v5  ;;  %s3319_s20 = sld [smem:[#allocation2 + $0x300]] }
  0x2a   :  { %475 = vmatpush.bf16.msra.mxu2 %v2655_v26  ;;  %v223_v15 = vunpack.c.l.b16 %v182_v6  ;;  %v364_v19 = vrot.slane %v362_v9, 7  ;;  %v222_v20 = vunpack.c.l.b16 %v181_v12  ;;  %v723_v21 = vadd.f32 %v721_v41, %v717_v40  ;;  %v2716_v26 = vld [vmem:[%s3621_s3 + $0x1e8] sm:$0xff]  ;;  %s3341_s2 = sld [smem:[#allocation2 + $0x302]] }
  0x2b   :  { %488 = vmatpush.bf16.msra.mxu3 %v2663_v27  ;;  %v727_v22 = vmul.f32 %v3056_v50, %v725_v4  ;;  %v366_v27 = vrot.slane %v363_v13, 7  ;;  %v224_v29 = vunpack.c.l.b16 %v183_v16  ;;  %v728_v25 = vadd.f32 %v726_v48, %v722_v47  ;;  %s3349_s16 = sld [smem:[#allocation2 + $0x380]] }
  0x2c   :  { %681 = vmatpush.bf16.msrb.mxu0 %v2694_v34  ;;  %v225_v28 = vrot.slane %v223_v15, 7  ;;  %v365_v34 = vsel %vm226_vm0, %v364_v19, %v360_v8  ;;  %v496_v4 = vmul.f32 %v495_v24, %v3005_v31  ;;  %v497_v36 = vmul.f32 %v3010_v32, %v495_v24  ;;  %v2699_v24 = vld [vmem:[%s3621_s3 + $0x160] sm:$0xff]  ;;  %v2714_v8 = vld [vmem:[%s3621_s3 + $0x1d8] sm:$0xff]  ;;  %s3352_s9 = sld [smem:[#allocation2 + $0x381]] }
  0x2d   :  { %694 = vmatpush.bf16.msrb.mxu1 %v2702_v35  ;;  %v729_v35 = vadd.f32 %v727_v22, %v723_v21  ;;  %v368_v39 = vpack.c.b16 %v365_v34, %v365_v34  ;;  %v367_v40 = vsel %vm226_vm0, %v366_v27, %v361_v11  ;;  %v732_v47 = vadd.f32 %v731_v10, %v728_v25  ;;  %v2689_v21 = vld [vmem:[%s3621_s3 + $0x110] sm:$0xff]  ;;  %s3421_s18 = sld [smem:[#allocation2 + $0x383]] }
  0x2e   :  { %895 = vmatpush.bf16.msrb.mxu2 %v2710_v42  ;;  %v227_v41 = vsel %vm226_vm0, %v225_v28, %v221_v14  ;;  %v228_v42 = vrot.slane %v224_v29, 7  ;;  %v369_v45 = vpack.c.b16 %v367_v40, %v367_v40  ;;  %v517_v48 = vstv %s3138_s19  ;;  %v2697_v22 = vld [vmem:[%s3621_s3 + $0x150] sm:$0xff]  ;;  %s3322_s19 = sld [smem:[#allocation2 + $0x301]] }
  0x2f   :  { %908 = vmatpush.bf16.msrb.mxu3 %v2718_v33  ;;  %v2691_v33 = vld [vmem:[%s3621_s3 + $0x120] sm:$0xff]  ;;  %v230_v46 = vpack.c.b16 %v227_v41, %v227_v41  ;;  %v733_v54 = vadd.f32 %v731_v10, %v729_v35  ;;  %v500_v55 = vmul.f32 %v3023_v37, %v499_v30  ;;  %v923_v56 = vstv %s3147_s30  ;;  %476 = vmatmul.bf16.vlgmr.msra.gmra.mxu2 %v368_v39  ;;  %v2705_v29 = vld [vmem:[%s3621_s3 + $0x190] sm:$0xff] }
  0x30   :  { %682 = vmatpush.bf16.msrb.mxu0 %v2693_v59  ;;  %v229_v53 = vsel %vm226_vm0, %v228_v42, %v222_v20  ;;  %489 = vmatmul.bf16.vlgmr.msra.gmra.mxu3 %v369_v45  ;;  %v734_v58 = vmax.f32 %v732_v47, 0.0  ;;  %v501_v59 = vmul.f32 %v3028_v38, %v499_v30  ;;  %v507_v62 = vmul.f32 %v3042_v44, %v505_v0  ;;  %v2690_v30 = vld [vmem:[%s3621_s3 + $0x118] sm:$0xff]  ;;  %v2713_v25 = vld [vmem:[%s3621_s3 + $0x1d0] sm:$0xff]  ;;  %v2688_v47 = vld [vmem:[%s3621_s3 + $0x108] sm:$0xff] }
  0x31   :  { %695 = vmatpush.bf16.msrb.mxu1 %v2701_v60  ;;  %v231_v57 = vpack.c.b16 %v229_v53, %v229_v53  ;;  %v506_v60 = vmul.f32 %v3037_v43, %v505_v0  ;;  %338 = vmatmul.bf16.vlgmr.msra.gmra.mxu0 %v230_v46  ;;  %v735_v10 = vmax.f32 %v733_v54, 0.0  ;;  %v502_v61 = vadd.f32 %v500_v55, %v496_v4  ;;  %v2706_v0 = vld [vmem:[%s3621_s3 + $0x198] sm:$0xff]  ;;  %v2704_v55 = vld [vmem:[%s3621_s3 + $0x188] sm:$0xff] }
  0x32   :  { %896 = vmatpush.bf16.msrb.mxu2 %v2709_v1  ;;  %v512_v63 = vmul.f32 %v3051_v49, %v511_v7  ;;  %v2698_v1 = vld [vmem:[%s3621_s3 + $0x158] sm:$0xff]  ;;  %v739_v3 = vperm.slane %v734_v58, 1  ;;  %v503_v5 = vadd.f32 %v501_v59, %v497_v36  ;;  %v513_v6 = vmul.f32 %v3056_v50, %v511_v7 }
  0x33   :  { %909 = vmatpush.bf16.msrb.mxu3 %v2717_v2  ;;  %v738_v2 = vperm.slane %v734_v58, 0  ;;  %v740_v9 = vperm.slane %v735_v10, 0  ;;  %v741_v11 = vperm.slane %v735_v10, 1  ;;  %v508_v12 = vadd.f32 %v506_v60, %v502_v61  ;;  %351 = vmatmul.bf16.vlgmr.msra.gmra.mxu1 %v231_v57 }
  0x34   :  { %683 = vmatpush.bf16.msrb.mxu0 %v2692_v17  ;;  %v924_v13 = vmul.f32 %v923_v56, %v3005_v31  ;;  %v747_v15 = vpack.c.bf16 %v739_v3, %v739_v3  ;;  %v509_v7 = vadd.f32 %v507_v62, %v503_v5  ;;  %v925_v16 = vmul.f32 %v3010_v32, %v923_v56  ;;  %v2712_v56 = vld [vmem:[%s3621_s3 + $0x1c8] sm:$0xff]  ;;  %v2687_v5 = vld [vmem:[%s3621_s3 + $0x100] sm:$0xff] }
  0x35   :  { %696 = vmatpush.bf16.msrb.mxu1 %v2700_v18  ;;  %v746_v14 = vpack.c.bf16 %v738_v2, %v738_v2  ;;  %v748_v17 = vpack.c.bf16 %v740_v9, %v740_v9  ;;  %v749_v18 = vpack.c.bf16 %v741_v11, %v741_v11  ;;  %v514_v19 = vadd.f32 %v512_v63, %v508_v12  ;;  %v2703_v12 = vld [vmem:[%s3621_s3 + $0x180] sm:$0xff] }
  0x36   :  { %897 = vmatpush.bf16.msrb.mxu2 %v2708_v23  ;;  %v927_v20 = vstv %s3173_s24  ;;  %v515_v27 = vadd.f32 %v513_v6, %v509_v7  ;;  %v933_v41 = vstv %s3197_s23  ;;  %v939_v42 = vstv %s3205_s25  ;;  %v2695_v6 = vld [vmem:[%s3621_s3 + $0x140] sm:$0xff]  ;;  %s3402_s25 = sld [smem:[#allocation2 + $0x382]] }
  0x37   :  { %910 = vmatpush.bf16.msrb.mxu3 %v2716_v26  ;;  %v787_v23 = vunpack.c.l.b16 %v746_v14  ;;  %v788_v26 = vunpack.c.l.b16 %v747_v15  ;;  %v928_v28 = vmul.f32 %v3023_v37, %v927_v20  ;;  %v789_v34 = vunpack.c.l.b16 %v748_v17  ;;  %v2726_v17 = vld [vmem:[%s3621_s3 + $0x238] sm:$0xff] }
  0x38   :  { %684 = vmatpush.bf16.msrb.mxu0 %v2691_v33  ;;  %v790_v35 = vunpack.c.l.b16 %v749_v18  ;;  %v518_v4 = vadd.f32 %v517_v48, %v514_v19  ;;  %v929_v36 = vmul.f32 %v3028_v38, %v927_v20  ;;  %v519_v39 = vadd.f32 %v517_v48, %v515_v27  ;;  %v2696_v48 = vld [vmem:[%s3621_s3 + $0x148] sm:$0xff]  ;;  %v2734_v18 = vld [vmem:[%s3621_s3 + $0x278] sm:$0xff] }
  0x39   :  { %697 = vmatpush.bf16.msrb.mxu1 %v2699_v24  ;;  %v930_v40 = vadd.f32 %v928_v28, %v924_v13  ;;  %v791_v33 = vrot.slane %v789_v34, 7  ;;  %v935_v53 = vmul.f32 %v3042_v44, %v933_v41  ;;  %v940_v54 = vmul.f32 %v3051_v49, %v939_v42  ;;  %v2711_v13 = vld [vmem:[%s3621_s3 + $0x1c0] sm:$0xff] }
  0x3a   :  { %898 = vmatpush.bf16.msrb.mxu2 %v2707_v51  ;;  %v793_v24 = vrot.slane %v790_v35, 7  ;;  %v520_v45 = vmax.f32 %v518_v4, 0.0  ;;  %v931_v46 = vadd.f32 %v929_v36, %v925_v16  ;;  %v521_v51 = vmax.f32 %v519_v39, 0.0 }
  0x3b   :  { %911 = vmatpush.bf16.msrb.mxu3 %v2715_v52  ;;  %v934_v52 = vmul.f32 %v3037_v43, %v933_v41  ;;  %v3275_v57 = vsel %vm226_vm0, %v791_v33, %v787_v23  ;;  %v941_v9 = vmul.f32 %v3056_v50, %v939_v42  ;;  %v945_v11 = vstv %s3238_s11  ;;  %v2742_v23 = vld [vmem:[%s3621_s3 + $0x2b8] sm:$0xff]  ;;  %v2725_v33 = vld [vmem:[%s3621_s3 + $0x230] sm:$0xff]  ;;  %s3360_s11 = sld [smem:[#allocation2 + $0x303]] }
  0x3c   :  { %685 = vmatpush.bf16.msrb.mxu0 %v2690_v30  ;;  %v3278_v58 = vsel %vm226_vm0, %v793_v24, %v788_v26  ;;  %v524_v59 = vperm.slane %v520_v45, 0  ;;  %v525_v60 = vperm.slane %v520_v45, 1  ;;  %v795_v10 = vpack.c.b16 %v3275_v57, %v3275_v57  ;;  %v2750_v26 = vld [vmem:[%s3621_s3 + $0x2f8] sm:$0xff]  ;;  %v2733_v24 = vld [vmem:[%s3621_s3 + $0x270] sm:$0xff]  ;;  %v2724_v57 = vld [vmem:[%s3621_s3 + $0x228] sm:$0xff] }
  0x3d   :  { %698 = vmatpush.bf16.msrb.mxu1 %v2698_v1  ;;  %v796_v61 = vpack.c.b16 %v3278_v58, %v3278_v58  ;;  %v526_v62 = vperm.slane %v521_v51, 0  ;;  %v527_v63 = vperm.slane %v521_v51, 1  ;;  %v936_v2 = vadd.f32 %v934_v52, %v930_v40  ;;  %v2741_v51 = vld [vmem:[%s3621_s3 + $0x2b0] sm:$0xff]  ;;  %v2732_v58 = vld [vmem:[%s3621_s3 + $0x268] sm:$0xff] }
  0x3e   :  { %899 = vmatpush.bf16.msrb.mxu2 %v2706_v0  ;;  %v532_v30 = vpack.c.bf16 %v524_v59, %v524_v59  ;;  %v533_v1 = vpack.c.bf16 %v525_v60, %v525_v60  ;;  %v937_v3 = vadd.f32 %v935_v53, %v931_v46  ;;  %v1137_v16 = vstv %s3249_s29  ;;  %v2749_v52 = vld [vmem:[%s3621_s3 + $0x2f0] sm:$0xff]  ;;  %s3441_s29 = sld [smem:[#allocation5 + $0x7]] }
  0x3f   :  { %912 = vmatpush.bf16.msrb.mxu3 %v2714_v8  ;;  %v534_v0 = vpack.c.bf16 %v526_v62, %v526_v62  ;;  %v535_v8 = vpack.c.bf16 %v527_v63, %v527_v63  ;;  %v942_v7 = vadd.f32 %v940_v54, %v936_v2  ;;  %v1139_v28 = vmul.f32 %v3010_v32, %v1137_v16 }
  0x40   :  { %686 = vmatpush.bf16.msrb.mxu0 %v2689_v21  ;;  %v573_v14 = vunpack.c.l.b16 %v532_v30  ;;  %v574_v15 = vunpack.c.l.b16 %v533_v1  ;;  %v943_v21 = vadd.f32 %v941_v9, %v937_v3  ;;  %v1153_v2 = vstv %s3299_s26 }
  0x41   :  { %699 = vmatpush.bf16.msrb.mxu1 %v2697_v22  ;;  %v575_v19 = vunpack.c.l.b16 %v534_v0  ;;  %v576_v20 = vunpack.c.l.b16 %v535_v8  ;;  %v1138_v22 = vmul.f32 %v1137_v16, %v3005_v31  ;;  %v946_v27 = vadd.f32 %v945_v11, %v942_v7 }
  0x42   :  { %900 = vmatpush.bf16.msrb.mxu2 %v2705_v29  ;;  %v1141_v29 = vstv %s3255_s10  ;;  %v947_v4 = vadd.f32 %v945_v11, %v943_v21  ;;  %v1154_v8 = vmul.f32 %v3051_v49, %v1153_v2  ;;  %v1155_v9 = vmul.f32 %v3056_v50, %v1153_v2 }
  0x43   :  { %913 = vmatpush.bf16.msrb.mxu3 %v2713_v25  ;;  %v1147_v25 = vstv %s3257_s14  ;;  %v577_v34 = vrot.slane %v575_v19, 7  ;;  %v579_v35 = vrot.slane %v576_v20, 7  ;;  %v1142_v36 = vmul.f32 %v3023_v37, %v1141_v29  ;;  %v2723_v19 = vld [vmem:[%s3621_s3 + $0x220] sm:$0xff] }
  0x44   :  { %687 = vmatpush.bf16.msrb.mxu0 %v2688_v47  ;;  %v948_v39 = vmax.f32 %v946_v27, 0.0  ;;  %v1143_v40 = vmul.f32 %v3028_v38, %v1141_v29  ;;  %v1148_v41 = vmul.f32 %v3037_v43, %v1147_v25  ;;  %v1149_v42 = vmul.f32 %v3042_v44, %v1147_v25  ;;  %v2731_v20 = vld [vmem:[%s3621_s3 + $0x260] sm:$0xff] }
  0x45   :  { %700 = vmatpush.bf16.msrb.mxu1 %v2696_v48  ;;  %v578_v45 = vsel %vm226_vm0, %v577_v34, %v573_v14  ;;  %v580_v46 = vsel %vm226_vm0, %v579_v35, %v574_v15  ;;  %v949_v47 = vmax.f32 %v947_v4, 0.0  ;;  %v1144_v48 = vadd.f32 %v1142_v36, %v1138_v22 }
  0x46   :  { %901 = vmatpush.bf16.msrb.mxu2 %v2704_v55  ;;  %v581_v53 = vpack.c.b16 %v578_v45, %v578_v45  ;;  %v582_v54 = vpack.c.b16 %v580_v46, %v580_v46  ;;  %v952_v55 = vperm.slane %v948_v39, 0  ;;  %v1145_v62 = vadd.f32 %v1143_v40, %v1139_v28 }
  0x47   :  { %914 = vmatpush.bf16.msrb.mxu3 %v2712_v56  ;;  %v953_v56 = vperm.slane %v948_v39, 1  ;;  %v954_v59 = vperm.slane %v949_v47, 0  ;;  %v955_v60 = vperm.slane %v949_v47, 1  ;;  %v1150_v1 = vadd.f32 %v1148_v41, %v1144_v48 }
  0x48   :  { %688 = vmatpush.bf16.msrb.mxu0 %v2687_v5  ;;  %v960_v63 = vpack.c.bf16 %v952_v55, %v952_v55  ;;  %v1151_v3 = vadd.f32 %v1149_v42, %v1145_v62  ;;  %v2740_v5 = vld [vmem:[%s3621_s3 + $0x2a8] sm:$0xff]  ;;  %v1159_v11 = vstv %s3308_s17  ;;  %v1351_v14 = vstv %s3319_s20  ;;  %s3385_s20 = sld [smem:[#allocation5 + $0x6]] }
  0x49   :  { %701 = vmatpush.bf16.msrb.mxu1 %v2695_v6  ;;  %v961_v30 = vpack.c.bf16 %v953_v56, %v953_v56  ;;  %v2748_v6 = vld [vmem:[%s3621_s3 + $0x2e8] sm:$0xff]  ;;  %v1355_v15 = vstv %s3322_s19  ;;  %v1156_v7 = vadd.f32 %v1154_v8, %v1150_v1  ;;  %v1352_v29 = vmul.f32 %v1351_v14, %v3005_v31  ;;  %v2745_v8 = vld [vmem:[%s3621_s3 + $0x2d0] sm:$0xff] }
  0x4a   :  { %902 = vmatpush.bf16.msrb.mxu2 %v2703_v12  ;;  %v1001_v0 = vunpack.c.l.b16 %v960_v63  ;;  %v1157_v16 = vadd.f32 %v1155_v9, %v1151_v3  ;;  %v1361_v25 = vstv %s3341_s2  ;;  %v1356_v35 = vmul.f32 %v3023_v37, %v1355_v15  ;;  %s2848_s2 = smov [#allocation7]  }
  0x4b   :  { %915 = vmatpush.bf16.msrb.mxu3 %v2711_v13  ;;  %689 = vmatmul.bf16.vlgmr.msrb.gmra.mxu0 %v581_v53  ;;  %v3383_v22 = vunpack.c.l.b16 %v961_v30  ;;  %v1160_v27 = vadd.f32 %v1159_v11, %v1156_v7  ;;  %v1565_v36 = vstv %s3349_s16  ;;  %v1569_v42 = vstv %s3352_s9  ;;  %s1844_s16 = sshll.u32 %s2848_s2, 4  ;;  %s1845_s16 = int_to_ptr.vmem [resolvable:$true] %s1844_s16 }
  0x4c   :  { %1109 = vmatpush.bf16.msra.mxu0 %v2726_v17  ;;  %702 = vmatmul.bf16.vlgmr.msrb.gmra.mxu1 %v582_v54  ;;  %v1353_v17 = vmul.f32 %v3010_v32, %v1351_v14  ;;  %v1161_v28 = vadd.f32 %v1159_v11, %v1157_v16  ;;  %v1358_v45 = vadd.f32 %v1356_v35, %v1352_v29  ;;  %v1367_v48 = vstv %s3360_s11 }
  0x4d   :  { %1122 = vmatpush.bf16.msra.mxu1 %v2734_v18  ;;  %903 = vmatmul.bf16.vlgmr.msrb.gmra.mxu2 %v795_v10  ;;  %v962_v10 = vpack.c.bf16 %v954_v59, %v954_v59  ;;  %v1357_v18 = vmul.f32 %v3028_v38, %v1355_v15  ;;  %v1162_v40 = vmax.f32 %v1160_v27, 0.0  ;;  %v1362_v46 = vmul.f32 %v3037_v43, %v1361_v25 }
  0x4e   :  { %1323 = vmatpush.bf16.msra.mxu2 %v2742_v23  ;;  %916 = vmatmul.bf16.vlgmr.msrb.gmra.mxu3 %v796_v61  ;;  %v963_v61 = vpack.c.bf16 %v955_v60, %v955_v60  ;;  %v2739_v23 = vld [vmem:[%s3621_s3 + $0x2a0] sm:$0xff]  ;;  %v1163_v41 = vmax.f32 %v1161_v28, 0.0  ;;  %v1363_v47 = vmul.f32 %v3042_v44, %v1361_v25  ;;  %v1368_v62 = vmul.f32 %v3051_v49, %v1367_v48  ;;  %v2744_v28 = vld [vmem:[%s3621_s3 + $0x2c8] sm:$0xff] }
  0x4f   :  { %1336 = vmatpush.bf16.msra.mxu3 %v2750_v26  ;;  %v1003_v12 = vunpack.c.l.b16 %v962_v10  ;;  %v2747_v26 = vld [vmem:[%s3621_s3 + $0x2e0] sm:$0xff]  ;;  %v1359_v4 = vadd.f32 %v1357_v18, %v1353_v17  ;;  %v1166_v53 = vperm.slane %v1162_v40, 0  ;;  %v1167_v55 = vperm.slane %v1162_v40, 1  ;;  %v2729_v10 = vld [vmem:[%s3621_s3 + $0x250] sm:$0xff] }
  0x50   :  { %1110 = vmatpush.bf16.msra.mxu0 %v2725_v33  ;;  %v3371_v13 = vunpack.c.l.b16 %v963_v61  ;;  %v2722_v33 = vld [vmem:[%s3621_s3 + $0x218] sm:$0xff]  ;;  %v1168_v54 = vperm.slane %v1163_v41, 0  ;;  %v1169_v56 = vperm.slane %v1163_v41, 1  ;;  %v1364_v59 = vadd.f32 %v1362_v46, %v1358_v45 }
  0x51   :  { %1123 = vmatpush.bf16.msra.mxu1 %v2733_v24  ;;  %v1005_v21 = vrot.slane %v1003_v12, 7  ;;  %v2730_v24 = vld [vmem:[%s3621_s3 + $0x258] sm:$0xff]  ;;  %v1365_v60 = vadd.f32 %v1363_v47, %v1359_v4  ;;  %v1369_v63 = vmul.f32 %v3056_v50, %v1367_v48  ;;  %v1174_v30 = vpack.c.bf16 %v1166_v53, %v1166_v53  ;;  %v2743_v47 = vld [vmem:[%s3621_s3 + $0x2c0] sm:$0xff] }
  0x52   :  { %1324 = vmatpush.bf16.msra.mxu2 %v2741_v51  ;;  %v1007_v34 = vrot.slane %v3371_v13, 7  ;;  %v2738_v51 = vld [vmem:[%s3621_s3 + $0x298] sm:$0xff]  ;;  %v1176_v1 = vpack.c.bf16 %v1168_v54, %v1168_v54  ;;  %v1175_v2 = vpack.c.bf16 %v1167_v55, %v1167_v55  ;;  %v1370_v61 = vadd.f32 %v1368_v62, %v1364_v59  ;;  %v2719_v13 = vld [vmem:[%s3621_s3 + $0x200] sm:$0xff] }
  0x53   :  { %1337 = vmatpush.bf16.msra.mxu3 %v2749_v52  ;;  %v3399_v39 = vsel %vm226_vm0, %v1005_v21, %v1001_v0  ;;  %v2746_v52 = vld [vmem:[%s3621_s3 + $0x2d8] sm:$0xff]  ;;  %v1371_v3 = vadd.f32 %v1369_v63, %v1365_v60  ;;  %v2737_v0 = vld [vmem:[%s3621_s3 + $0x290] sm:$0xff]  ;;  %v1215_v9 = vunpack.c.l.b16 %v1174_v30  ;;  %v1567_v16 = vmul.f32 %v3010_v32, %v1565_v36  ;;  %v2720_v21 = vld [vmem:[%s3621_s3 + $0x208] sm:$0xff] }
  0x54   :  { %1111 = vmatpush.bf16.msra.mxu0 %v2724_v57  ;;  %v1177_v57 = vpack.c.bf16 %v1169_v56, %v1169_v56  ;;  %v1217_v11 = vunpack.c.l.b16 %v1176_v1  ;;  %v1216_v12 = vunpack.c.l.b16 %v1175_v2  ;;  %v2728_v32 = vld [vmem:[%s3621_s3 + $0x248] sm:$0xff]  ;;  %v1008_v29 = vsel %vm226_vm0, %v1007_v34, %v3383_v22  ;;  %v2727_v22 = vld [vmem:[%s3621_s3 + $0x240] sm:$0xff]  ;;  %v2758_v53 = vld [vmem:[%s3621_s3 + $0x338] sm:$0xff] }
  0x55   :  { %1124 = vmatpush.bf16.msra.mxu1 %v2732_v58  ;;  %v2721_v58 = vld [vmem:[%s3621_s3 + $0x210] sm:$0xff]  ;;  %v1581_v40 = vstv %s3421_s18  ;;  %v2774_v60 = vld [vmem:[%s3621_s3 + $0x3b8] sm:$0xff]  ;;  %v1009_v63 = vpack.c.b16 %v3399_v39, %v3399_v39  ;;  %v1587_v2 = vstv %s3441_s29 }
  0x56   :  { %1325 = vmatpush.bf16.msra.mxu2 %v2740_v5  ;;  %v1373_v5 = vstv %s3385_s20  ;;  %v1218_v14 = vunpack.c.l.b16 %v1177_v57  ;;  %v1219_v17 = vrot.slane %v1217_v11, 7  ;;  %v1582_v46 = vmul.f32 %v3051_v49, %v1581_v40  ;;  %v2766_v49 = vld [vmem:[%s3621_s3 + $0x378] sm:$0xff]  ;;  %v2757_v39 = vld [vmem:[%s3621_s3 + $0x330] sm:$0xff] }
  0x57   :  { %1338 = vmatpush.bf16.msra.mxu3 %v2748_v6  ;;  %v1566_v6 = vmul.f32 %v1565_v36, %v3005_v31  ;;  %v1374_v15 = vadd.f32 %v1373_v5, %v1370_v61  ;;  %v1375_v7 = vadd.f32 %v1373_v5, %v1371_v3  ;;  %v1570_v31 = vmul.f32 %v3023_v37, %v1569_v42  ;;  %v2782_v62 = vld [vmem:[%s3621_s3 + $0x3f8] sm:$0xff]  ;;  %v2773_v11 = vld [vmem:[%s3621_s3 + $0x3b0] sm:$0xff] }
  0x58   :  { %1112 = vmatpush.bf16.msra.mxu0 %v2723_v19  ;;  %v1221_v18 = vrot.slane %v1218_v14, 7  ;;  %v1571_v19 = vmul.f32 %v3028_v38, %v1569_v42  ;;  %v2736_v38 = vld [vmem:[%s3621_s3 + $0x288] sm:$0xff]  ;;  %v3461_v25 = vsel %vm226_vm0, %v1219_v17, %v1215_v9  ;;  %v1583_v56 = vmul.f32 %v3056_v50, %v1581_v40 }
  0x59   :  { %1125 = vmatpush.bf16.msra.mxu1 %v2731_v20  ;;  %v1575_v20 = vstv %s3402_s25  ;;  %v1377_v37 = vmax.f32 %v1375_v7, 0.0  ;;  %v1010_v57 = vpack.c.b16 %v1008_v29, %v1008_v29  ;;  %v1223_v61 = vpack.c.b16 %v3461_v25, %v3461_v25  ;;  %v2764_v17 = vld [vmem:[%s3621_s3 + $0x368] sm:$0xff] }
  0x5a   :  { %1326 = vmatpush.bf16.msra.mxu2 %v2739_v23  ;;  %v1376_v23 = vmax.f32 %v1374_v15, 0.0  ;;  %v1576_v27 = vmul.f32 %v3037_v43, %v1575_v20  ;;  %v1573_v35 = vadd.f32 %v1571_v19, %v1567_v16  ;;  %v3464_v43 = vsel %vm226_vm0, %v1221_v18, %v1216_v12  ;;  %v2781_v12 = vld [vmem:[%s3621_s3 + $0x3f0] sm:$0xff] }
  0x5b   :  { %1339 = vmatpush.bf16.msra.mxu3 %v2747_v26  ;;  %v1572_v26 = vadd.f32 %v1570_v31, %v1566_v6  ;;  %v1382_v36 = vperm.slane %v1377_v37, 0  ;;  %v1383_v42 = vperm.slane %v1377_v37, 1  ;;  %v1224_v3 = vpack.c.b16 %v3464_v43, %v3464_v43  ;;  %v2765_v6 = vld [vmem:[%s3621_s3 + $0x370] sm:$0xff]  ;;  %v2756_v31 = vld [vmem:[%s3621_s3 + $0x328] sm:$0xff]  ;;  %v2771_v43 = vld [vmem:[%s3621_s3 + $0x3a0] sm:$0xff] }
  0x5c   :  { %1113 = vmatpush.bf16.msra.mxu0 %v2722_v33  ;;  %v1380_v4 = vperm.slane %v1376_v23, 0  ;;  %v1381_v41 = vperm.slane %v1376_v23, 1  ;;  %v1577_v33 = vmul.f32 %v3042_v44, %v1575_v20  ;;  %v2735_v44 = vld [vmem:[%s3621_s3 + $0x280] sm:$0xff]  ;;  %v2780_v23 = vld [vmem:[%s3621_s3 + $0x3e8] sm:$0xff] }
  0x5d   :  { %1126 = vmatpush.bf16.msra.mxu1 %v2730_v24  ;;  %v1578_v24 = vadd.f32 %v1576_v27, %v1572_v26  ;;  %v1390_v45 = vpack.c.bf16 %v1382_v36, %v1382_v36  ;;  %v2755_v27 = vld [vmem:[%s3621_s3 + $0x320] sm:$0xff] }
  0x5e   :  { %1327 = vmatpush.bf16.msra.mxu2 %v2738_v51  ;;  %v1388_v34 = vpack.c.bf16 %v1380_v4, %v1380_v4  ;;  %v1389_v48 = vpack.c.bf16 %v1381_v41, %v1381_v41  ;;  %v1391_v51 = vpack.c.bf16 %v1383_v42, %v1383_v42  ;;  %v2779_v4 = vld [vmem:[%s3621_s3 + $0x3e0] sm:$0xff]  ;;  %v2754_v41 = vld [vmem:[%s3621_s3 + $0x318] sm:$0xff] }
  0x5f   :  { %1340 = vmatpush.bf16.msra.mxu3 %v2746_v52  ;;  %v1579_v52 = vadd.f32 %v1577_v33, %v1573_v35  ;;  %v1431_v55 = vunpack.c.l.b16 %v1390_v45  ;;  %v1584_v59 = vadd.f32 %v1582_v46, %v1578_v24  ;;  %v2762_v42 = vld [vmem:[%s3621_s3 + $0x358] sm:$0xff]  ;;  %v2761_v45 = vld [vmem:[%s3621_s3 + $0x350] sm:$0xff] }
  0x60   :  { %1114 = vmatpush.bf16.msra.mxu0 %v2721_v58  ;;  %v1429_v54 = vunpack.c.l.b16 %v1388_v34  ;;  %v1430_v30 = vunpack.c.l.b16 %v1389_v48  ;;  %v1432_v1 = vunpack.c.l.b16 %v1391_v51  ;;  %v2753_v34 = vld [vmem:[%s3621_s3 + $0x310] sm:$0xff]  ;;  %v2760_v48 = vld [vmem:[%s3621_s3 + $0x348] sm:$0xff] }
  0x61   :  { %1127 = vmatpush.bf16.msra.mxu1 %v2729_v10  ;;  %v1433_v58 = vrot.slane %v1431_v55, 7  ;;  %v1585_v50 = vadd.f32 %v1583_v56, %v1579_v52  ;;  %v1588_v10 = vadd.f32 %v1587_v2, %v1584_v59  ;;  %v2769_v46 = vld [vmem:[%s3621_s3 + $0x390] sm:$0xff]  ;;  %v2768_v51 = vld [vmem:[%s3621_s3 + $0x388] sm:$0xff]  ;;  %v2775_v55 = vld [vmem:[%s3621_s3 + $0x3c0] sm:$0xff] }
  0x62   :  { %1328 = vmatpush.bf16.msra.mxu2 %v2737_v0  ;;  %v1435_v5 = vrot.slane %v1432_v1, 7  ;;  %v2776_v52 = vld [vmem:[%s3621_s3 + $0x3c8] sm:$0xff] }
  0x63   :  { %1341 = vmatpush.bf16.msra.mxu3 %v2745_v8  ;;  %v3508_v0 = vsel %vm226_vm0, %v1433_v58, %v1429_v54  ;;  %v1589_v8 = vadd.f32 %v1587_v2, %v1585_v50  ;;  %v1590_v9 = vmax.f32 %v1588_v10, 0.0  ;;  %v2767_v54 = vld [vmem:[%s3621_s3 + $0x380] sm:$0xff] }
  0x64   :  { %1115 = vmatpush.bf16.msra.mxu0 %v2720_v21  ;;  %v3517_v14 = vsel %vm226_vm0, %v1435_v5, %v1430_v30  ;;  %v1437_v56 = vpack.c.b16 %v3508_v0, %v3508_v0 }
  0x65   :  { %1128 = vmatpush.bf16.msra.mxu1 %v2728_v32  ;;  %v1591_v15 = vmax.f32 %v1589_v8, 0.0  ;;  %v1594_v7 = vperm.slane %v1590_v9, 0  ;;  %v1595_v16 = vperm.slane %v1590_v9, 1  ;;  %v2772_v32 = vld [vmem:[%s3621_s3 + $0x3a8] sm:$0xff]  ;;  %v1438_v59 = vpack.c.b16 %v3517_v14, %v3517_v14 }
  0x66   :  { %1329 = vmatpush.bf16.msra.mxu2 %v2736_v38  ;;  %v2763_v38 = vld [vmem:[%s3621_s3 + $0x360] sm:$0xff] }
  0x67   :  { %1342 = vmatpush.bf16.msra.mxu3 %v2744_v28  ;;  %v1596_v18 = vperm.slane %v1591_v15, 0  ;;  %v1602_v19 = vpack.c.bf16 %v1594_v7, %v1594_v7  ;;  %v1597_v20 = vperm.slane %v1591_v15, 1  ;;  %v1603_v21 = vpack.c.bf16 %v1595_v16, %v1595_v16  ;;  %v2786_v15 = vld [vmem:[%s3623_s5 + $0x18] sm:$0xff] }
  0x68   :  { %1116 = vmatpush.bf16.msra.mxu0 %v2719_v13  ;;  %v2770_v13 = vld [vmem:[%s3621_s3 + $0x398] sm:$0xff] }
  0x69   :  { %1129 = vmatpush.bf16.msra.mxu1 %v2727_v22  ;;  %v1604_v37 = vpack.c.bf16 %v1596_v18, %v1596_v18  ;;  %v1605_v26 = vpack.c.bf16 %v1597_v20, %v1597_v20  ;;  %v1643_v28 = vunpack.c.l.b16 %v1602_v19  ;;  %v1644_v25 = vunpack.c.l.b16 %v1603_v21  ;;  %v2778_v22 = vld [vmem:[%s3621_s3 + $0x3d8] sm:$0xff] }
  0x6a   :  { %1330 = vmatpush.bf16.msra.mxu2 %v2735_v44  ;;  %v2777_v44 = vld [vmem:[%s3621_s3 + $0x3d0] sm:$0xff] }
  0x6b   :  { %1343 = vmatpush.bf16.msra.mxu3 %v2743_v47  ;;  %1117 = vmatmul.bf16.vlgmr.msra.gmra.mxu0 %v1009_v63  ;;  %v1645_v29 = vunpack.c.l.b16 %v1604_v37  ;;  %v1646_v35 = vunpack.c.l.b16 %v1605_v26  ;;  %v2752_v47 = vld [vmem:[%s3621_s3 + $0x308] sm:$0xff] }
  0x6c   :  { %1537 = vmatpush.bf16.msrb.mxu0 %v2758_v53  ;;  %1130 = vmatmul.bf16.vlgmr.msra.gmra.mxu1 %v1010_v57  ;;  %v2751_v53 = vld [vmem:[%s3621_s3 + $0x300] sm:$0xff] }
  0x6d   :  { %1550 = vmatpush.bf16.msrb.mxu1 %v2766_v49  ;;  %1331 = vmatmul.bf16.vlgmr.msra.gmra.mxu2 %v1223_v61  ;;  %v1647_v36 = vrot.slane %v1645_v29, 7  ;;  %v1649_v40 = vrot.slane %v1646_v35, 7  ;;  %v2759_v49 = vld [vmem:[%s3621_s3 + $0x340] sm:$0xff] }
  0x6e   :  { %1751 = vmatpush.bf16.msrb.mxu2 %v2774_v60  ;;  %1344 = vmatmul.bf16.vlgmr.msra.gmra.mxu3 %v1224_v3 }
  0x6f   :  { %1764 = vmatpush.bf16.msrb.mxu3 %v2782_v62  ;;  %v1648_v33 = vsel %vm226_vm0, %v1647_v36, %v1643_v28  ;;  %v1650_v24 = vsel %vm226_vm0, %v1649_v40, %v1644_v25 }
  0x70   :  { %1538 = vmatpush.bf16.msrb.mxu0 %v2757_v39  ;;  %v1651_v60 = vpack.c.b16 %v1648_v33, %v1648_v33  ;;  %v1652_v62 = vpack.c.b16 %v1650_v24, %v1650_v24 }
  0x71   :  { %1551 = vmatpush.bf16.msrb.mxu1 %v2765_v6 }
  0x72   :  { %1752 = vmatpush.bf16.msrb.mxu2 %v2773_v11 }
  0x73   :  { %1765 = vmatpush.bf16.msrb.mxu3 %v2781_v12 }
  0x74   :  { %1539 = vmatpush.bf16.msrb.mxu0 %v2756_v31  ;;  %v2785_v31 = vld [vmem:[%s3623_s5 + $0x10] sm:$0xff] }
  0x75   :  { %1552 = vmatpush.bf16.msrb.mxu1 %v2764_v17  ;;  %v2784_v17 = vld [vmem:[%s3623_s5 + $0x8] sm:$0xff] }
  0x76   :  { %1753 = vmatpush.bf16.msrb.mxu2 %v2772_v32  ;;  %v2783_v32 = vld [vmem:[%s3623_s5] sm:$0xff] }
  0x77   :  { %1766 = vmatpush.bf16.msrb.mxu3 %v2780_v23 }
  0x78   :  { %1540 = vmatpush.bf16.msrb.mxu0 %v2755_v27 }
  0x79   :  { %1553 = vmatpush.bf16.msrb.mxu1 %v2763_v38 }
  0x7a   :  { %1754 = vmatpush.bf16.msrb.mxu2 %v2771_v43 }
  0x7b   :  { %1767 = vmatpush.bf16.msrb.mxu3 %v2779_v4 }
  0x7c   :  { %1541 = vmatpush.bf16.msrb.mxu0 %v2754_v41 }
  0x7d   :  { %1554 = vmatpush.bf16.msrb.mxu1 %v2762_v42 }
  0x7e   :  { %1755 = vmatpush.bf16.msrb.mxu2 %v2770_v13  ;;  %v2790_v13 = vld [vmem:[%s3622_s4] ss:$0 sm:$0xff]  ;;  %s1846_s4 = sshll.u32 %s3625_s7, 4  ;;  %s1847_s4 = int_to_ptr.hbm [resolvable:$true] %s1846_s4 }
  0x7f   :  { %1768 = vmatpush.bf16.msrb.mxu3 %v2778_v22 }
  0x80   :  { %1542 = vmatpush.bf16.msrb.mxu0 %v2753_v34 }
  0x81   :  { %1555 = vmatpush.bf16.msrb.mxu1 %v2761_v45 }
  0x82   :  { %1756 = vmatpush.bf16.msrb.mxu2 %v2769_v46 }
  0x83   :  { %1769 = vmatpush.bf16.msrb.mxu3 %v2777_v44 }
  0x84   :  { %1543 = vmatpush.bf16.msrb.mxu0 %v2752_v47 }
  0x85   :  { %1556 = vmatpush.bf16.msrb.mxu1 %v2760_v48 }
  0x86   :  { %1757 = vmatpush.bf16.msrb.mxu2 %v2768_v51 }
  0x87   :  { %1770 = vmatpush.bf16.msrb.mxu3 %v2776_v52  ;;  %v2791_v52 = vld [vmem:[%s3624_s6] ss:$0 sm:$0xff] }
  0x88   :  { %1544 = vmatpush.bf16.msrb.mxu0 %v2751_v53 }
  0x89   :  { %1557 = vmatpush.bf16.msrb.mxu1 %v2759_v49 }
  0x8a   :  { %1758 = vmatpush.bf16.msrb.mxu2 %v2767_v54 }
  0x8b   :  { %1771 = vmatpush.bf16.msrb.mxu3 %v2775_v55  ;;  %1545 = vmatmul.bf16.vlgmr.msrb.gmra.mxu0 %v1437_v56 }
  0x8c   :  { %1558 = vmatmul.bf16.vlgmr.msrb.gmra.mxu1 %v1438_v59  ;;  %1829 = vmatpush.bf16.msra.mxu0 %v2786_v15 }
  0x8d   :  { %1759 = vmatmul.bf16.vlgmr.msrb.gmra.mxu2 %v1651_v60 }
  0x8e   :  { %1772 = vmatmul.bf16.vlgmr.msrb.gmra.mxu3 %v1652_v62 }
  0x90   :  { %1830 = vmatpush.bf16.msra.mxu0 %v2785_v31 }
  0x94   :  { %1831 = vmatpush.bf16.msra.mxu0 %v2784_v17 }
  0x98   :  { %1832 = vmatpush.bf16.msra.mxu0 %v2783_v32 }
  0xae   :  { %v339_v63 = vpop.f32.mrf.mxu0 }
  0xb0   :  { %v352_v30 = vpop.f32.mrf.mxu1 }
  0xb1   :  { %v353_v1 = vadd.f32 %v352_v30, %v339_v63 }
  0xb2   :  { %v477_v2 = vpop.f32.mrf.mxu2 }
  0xb3   :  { %v490_v57 = vpop.f32.mrf.mxu3  ;;  %v478_v58 = vadd.f32 %v477_v2, %v353_v1 }
  0xb5   :  { %v491_v50 = vadd.f32 %v490_v57, %v478_v58 }
  0xb6   :  { %v341_v10 = vpop.f32.mrf.mxu0 }
  0xb8   :  { %v354_v61 = vpop.f32.mrf.mxu1 }
  0xba   :  { %v479_v3 = vpop.f32.mrf.mxu2 }
  0xbb   :  { %v492_v5 = vpop.f32.mrf.mxu3 }
  0xc8   :  { %v690_v39 = vpop.f32.mrf.mxu0 }
  0xc9   :  { %v703_v6 = vpop.f32.mrf.mxu1 }
  0xca   :  { %v704_v26 = vadd.f32 %v703_v6, %v690_v39 }
  0xcc   :  { %v707_v27 = vadd.f32 %v704_v26, %v491_v50 }
  0xd0   :  { %v904_v0 = vpop.f32.mrf.mxu2  ;;  %v692_v9 = vpop.f32.mrf.mxu0 }
  0xd1   :  { %v917_v8 = vpop.f32.mrf.mxu3  ;;  %v705_v11 = vpop.f32.mrf.mxu1 }
  0xd2   :  { %v918_v38 = vadd.f32 %v917_v8, %v904_v0 }
  0xd4   :  { %v921_v35 = vadd.f32 %v918_v38, %v707_v27 }
  0xd8   :  { %v906_v12 = vpop.f32.mrf.mxu2 }
  0xd9   :  { %v919_v14 = vpop.f32.mrf.mxu3 }
  0xe8   :  { %v1118_v7 = vpop.f32.mrf.mxu0 }
  0xe9   :  { %v1131_v16 = vpop.f32.mrf.mxu1 }
  0xea   :  { %v1132_v28 = vadd.f32 %v1131_v16, %v1118_v7 }
  0xec   :  { %v1135_v4 = vadd.f32 %v1132_v28, %v921_v35 }
  0xf0   :  { %v1332_v18 = vpop.f32.mrf.mxu2  ;;  %v1120_v20 = vpop.f32.mrf.mxu0 }
  0xf1   :  { %v1345_v19 = vpop.f32.mrf.mxu3  ;;  %v1133_v21 = vpop.f32.mrf.mxu1 }
  0xf2   :  { %v1346_v43 = vadd.f32 %v1345_v19, %v1332_v18 }
  0xf4   :  { %v1349_v40 = vadd.f32 %v1346_v43, %v1135_v4 }
  0xf8   :  { %v1334_v23 = vpop.f32.mrf.mxu2 }
  0xf9   :  { %v1347_v37 = vpop.f32.mrf.mxu3 }
 0x108   :  { %v1546_v29 = vpop.f32.mrf.mxu0 }
 0x109   :  { %v1559_v25 = vpop.f32.mrf.mxu1 }
 0x10a   :  { %v1560_v36 = vadd.f32 %v1559_v25, %v1546_v29 }
 0x10c   :  { %v1563_v33 = vadd.f32 %v1560_v36, %v1349_v40 }
 0x110   :  { %v1760_v41 = vpop.f32.mrf.mxu2  ;;  %v1548_v22 = vpop.f32.mrf.mxu0 }
 0x111   :  { %v1773_v42 = vpop.f32.mrf.mxu3  ;;  %v1561_v34 = vpop.f32.mrf.mxu1 }
 0x112   :  { %v1774_v24 = vadd.f32 %v1773_v42, %v1760_v41 }
 0x114   :  { %v1777_v45 = vadd.f32 %v1774_v24, %v1563_v33 }
 0x116   :  { %v1782_v46 = vadd.f32 %v2790_v13, %v1777_v45 }
 0x118   :  { %v1783_v44 = vmax.f32 %v1782_v46, 0.0  ;;  %v1762_v47 = vpop.f32.mrf.mxu2 }
 0x119   :  { %v1775_v48 = vpop.f32.mrf.mxu3 }
 0x11a   :  { %v1784_v51 = vpack.c.bf16 %v1783_v44, %v1783_v44 }
 0x11c   :  { %2654 = vmatmul.msk.bf16.vlgmr.msra.gmra.mxu0 %vm1821_vm1, %v1784_v51 }
 0x199   :  { %v1834_v53 = vpop.f32.mrf.mxu0 }
 0x19a   :  { %v1835_v49 = vadd.f32 %v2791_v52, %v1834_v53 }
 0x19c   :  { %1838 = vst [vmem:[#allocation7] sm:$0x3] %v1835_v49 }
 0x19d   :  { %1849 = dma.vmem_to_hbm [thread:$0]  %s1845_s16, 32, %s1847_s4, [#allocation3]  }
 0x1a1   :  { %v1836_v54 = vpop.f32.mrf.mxu0 }
 0x1a2   :  { %2844 = dma.done.wait [#allocation3], 32  }
 0x1a3   :  { %2845 = vsyncadd [#allocation3], 4294967264 }
 0x1a4   :  { %1854 = vsyncpa [#allocation3], 1 }
 0x1a5   :  { %1855 = vsyncpa [#allocation4], 1 }
 0x1a6   :  { %1856 = vsyncpa [#allocation6], 1 }

</bundles_post_ra>
